<compile_context>
chip_gen: v7x
topology: tpu7x:2x2x1
jax: 0.10.0
libtpu: 0.0.40
codegen_flags: <defaults>
</compile_context>

<pallas_src>
import functools

import jax
import jax.numpy as jnp
from jax.experimental import pallas as pl
from jax.experimental.pallas import tpu as pltpu


def _attention_kernel(x_ref, wqkv_ref, wout_ref, bout_ref, o_ref, *,
                      heads, dim_head, row_len):
    """One grid step = a block of several independent length-`row_len` rows.

    x_ref   : (T, C)            bf16, token-major (T = rows_per_block * row_len)
    wqkv_ref: (C, 3*inner)      bf16, pre-transposed; softmax scale folded into Q cols
    wout_ref: (heads, dh, C)    bf16, pre-transposed per-head output projection
    bout_ref: (1, C)            f32
    o_ref   : (T, C)            x.dtype
    """
    T, C = x_ref.shape
    inner = heads * dim_head
    R = T // row_len                       # independent attention rows in this block

    # Single fused QKV projection over every token in the block
    # (bf16 MXU inputs, f32 accumulation).
    qkv = jnp.dot(x_ref[...], wqkv_ref[...],
                  preferred_element_type=jnp.float32)             # (T, 3*inner) f32

    # View as (rows, W, 3*inner).  With row_len a multiple of the 8-row sublane
    # tile this is vreg-aligned (layout-preserving); otherwise it is a cheap
    # in-VMEM relayout -- correctness never depends on it.
    qkv = qkv.reshape(R, row_len, 3 * inner)

    acc = jnp.zeros((T, C), dtype=jnp.float32)
    for h in range(heads):                        # static unroll, heads is small
        lo = h * dim_head
        q = qkv[:, :, lo:lo + dim_head]                 # (R, W, dh), scale pre-folded
        k = qkv[:, :, inner + lo:inner + lo + dim_head]
        v = qkv[:, :, 2 * inner + lo:2 * inner + lo + dim_head]

        # Batched attention: each of the R rows only attends within itself,
        # so no block-diagonal masking is needed.
        dots = jnp.einsum('rwd,rxd->rwx', q, k,
                          preferred_element_type=jnp.float32)     # (R, W, W)

        # Softmax kept in f32 (v5e has no bf16 VPU/EUP path).
        m = jnp.max(dots, axis=-1, keepdims=True)
        p = jnp.exp(dots - m)
        attn = p * pl.reciprocal(jnp.sum(p, axis=-1, keepdims=True), approx=True)

        head_out = jnp.einsum('rwx,rxd->rwd', attn, v,
                              preferred_element_type=jnp.float32)  # (R, W, dh)

        # Output projection distributed over heads:
        #   concat_h(out_h) @ Wout == sum_h out_h @ Wout_h
        # so no lane-concatenate of narrow head outputs is needed.
        acc = acc + jnp.dot(head_out.reshape(T, dim_head),
                            wout_ref[h].astype(jnp.float32),
                            preferred_element_type=jnp.float32)      # (T, C)

    o_ref[...] = (acc + bout_ref[...]).astype(o_ref.dtype)


def _pick_num_blocks(BH, W):
    """Largest divisor of B*H that (a) keeps >= ~1024 tokens per block and
    (b) keeps the per-block sublane extent a multiple of 8 (BlockSpec rule).
    At least 2 blocks when possible so both v7x TensorCores get work;
    v5e/v6e simply run the blocks back-to-back on their single core."""
    total_tokens = BH * W
    max_blocks = max(2, total_tokens // 1024)
    best = 1
    for d in range(1, BH + 1):
        if BH % d != 0 or d > max_blocks:
            continue
        tok = (BH // d) * W
        if d > 1 and tok % 8 != 0:
            continue                      # would violate the (8, 128) block rule
        best = max(best, d)
    return best


def attention_forward(x, w_qkv, w_out, b_out, *, heads, dim_head):
    """x: (B, H, W, C) -> (B, H, W, C).  Requires heads*dim_head == C
    (same constraint as the reshape in the reference PyTorch forward)."""
    B, H, W, C = x.shape
    inner = heads * dim_head
    assert inner == C, "reference forward requires heads*dim_head == C"
    scale = dim_head ** (-0.5)

    BH = B * H
    T_total = BH * W

    # ---- one-time host-side prep (free): fold scale, pre-transpose, bf16 ----
    w_qkv_scaled = w_qkv.at[:inner, :].multiply(scale)          # Q output rows
    wqkv_t = jnp.transpose(w_qkv_scaled).astype(jnp.bfloat16)         # (C, 3*inner)
    wout_h = jnp.transpose(w_out).reshape(heads, dim_head, C).astype(jnp.bfloat16)
    bias = b_out.reshape(1, C).astype(jnp.float32)
    x_tok = x.reshape(T_total, C).astype(jnp.bfloat16)    # token-major, contiguous DMAs

    num_blocks = _pick_num_blocks(BH, W)
    tok_per_block = (BH // num_blocks) * W

    kernel = functools.partial(_attention_kernel, heads=heads,
                               dim_head=dim_head, row_len=W)

    out_tok = pl.pallas_call(
        kernel,
        out_shape=jax.ShapeDtypeStruct((T_total, C), x.dtype),
        grid_spec=pltpu.PrefetchScalarGridSpec(
            num_scalar_prefetch=0,
            grid=(num_blocks,),
            in_specs=[
                pl.BlockSpec((tok_per_block, C), lambda i: (i, 0)),       # x tokens
                pl.BlockSpec((C, 3 * inner), lambda i: (0, 0)),           # Wqkv^T
                pl.BlockSpec((heads, dim_head, C), lambda i: (0, 0, 0)),  # Wout^T per head
                pl.BlockSpec((1, C), lambda i: (0, 0)),                   # bias
            ],
            out_specs=pl.BlockSpec((tok_per_block, C), lambda i: (i, 0)),
        ),
        compiler_params=pltpu.CompilerParams(
            dimension_semantics=("parallel",),
            # Tiny at demo shapes; re-derive tok_per_block against the 64 MiB
            # VMEM budget on v7x before scaling to real occupancy-grid H/W.
            vmem_limit_bytes=32 * 1024 * 1024),
    )(x_tok, wqkv_t, wout_h, bias)

    return out_tok.reshape(B, H, W, C)


def _reference(x, w_qkv, w_out, b_out, *, heads, dim_head):
    """Pure-JAX f32 reproduction of the PyTorch forward, for verification."""
    B, H, W, C = x.shape
    scale = dim_head ** (-0.5)
    qkv = jnp.einsum('bhwc,oc->bhwo', x, w_qkv)                    # (B,H,W,3*inner)
    qkv = qkv.reshape(B, H, W, 3, heads, dim_head)
    qkv = jnp.transpose(qkv, (3, 0, 4, 1, 2, 5))                   # (3,B,heads,H,W,dh)
    q, k, v = qkv[0], qkv[1], qkv[2]
    dots = jnp.einsum('bnhwd,bnhxd->bnhwx', q, k) * scale
    attn = jax.nn.softmax(dots, axis=-1)
    out = jnp.einsum('bnhwx,bnhxd->bnhwd', attn, v)
    out = jnp.transpose(out, (0, 2, 3, 1, 4)).reshape(B, H, W, C)
    return jnp.einsum('bhwc,oc->bhwo', out, w_out) + b_out[0]


if __name__ == "__main__":
    # Small shapes consistent with the module's forward (needs heads*dh == C).
    B, H, W = 2, 8, 8
    heads, dim_head = 4, 8
    dim = heads * dim_head            # 32

    key = jax.random.PRNGKey(0)
    k_x, k_qkv, k_out, k_b = jax.random.split(key, 4)

    x = jax.random.normal(k_x, (B, H, W, dim), dtype=jnp.float32)
    # PyTorch Linear layout: (out_features, in_features).
    w_qkv = jax.random.normal(k_qkv, (3 * dim, dim), dtype=jnp.float32) * 0.05
    w_out = jax.random.normal(k_out, (dim, dim), dtype=jnp.float32) * 0.05
    b_out = jax.random.normal(k_b, (1, dim), dtype=jnp.float32) * 0.05

    out = attention_forward(x, w_qkv, w_out, b_out, heads=heads, dim_head=dim_head)
    out = jax.block_until_ready(out)

    ref = _reference(x, w_qkv, w_out, b_out, heads=heads, dim_head=dim_head)
    assert out.shape == (B, H, W, dim)
    # bf16 matmul inputs (x, weights) -> compare at a bf16-appropriate tolerance.
    assert jnp.allclose(out, ref, atol=1e-2, rtol=1e-2), "mismatch vs reference"

    print("KERNEL_OK")
</pallas_src>

<mosaic_0001>
module attributes {stable_mosaic.version = 11 : i64} {
  func.func @_attention_kernel(%arg0: i32, %arg1: memref<64x32xbf16, #tpu.memory_space<vmem>>, %arg2: memref<32x96xbf16, #tpu.memory_space<vmem>>, %arg3: memref<4x8x32xbf16, #tpu.memory_space<vmem>>, %arg4: memref<1x32xf32, #tpu.memory_space<vmem>>, %arg5: memref<64x32xf32, #tpu.memory_space<vmem>>) attributes {dimension_semantics = [#tpu.dimension_semantics<parallel>], iteration_bounds = array<i64: 2>, scalar_prefetch = 0 : i64, scratch_operands = 0 : i64, tpu.core_type = #tpu.core_type<tc>, window_params = [{transform_indices = @transform_0, window_bounds = array<i64: 64, 32>}, {pipeline_mode = #tpu.pipeline_mode<synchronous>, transform_indices = @transform_1, window_bounds = array<i64: 32, 96>}, {pipeline_mode = #tpu.pipeline_mode<synchronous>, transform_indices = @transform_2, window_bounds = array<i64: 4, 8, 32>}, {pipeline_mode = #tpu.pipeline_mode<synchronous>, transform_indices = @transform_3, window_bounds = array<i64: 1, 32>}, {transform_indices = @transform_4, window_bounds = array<i64: 64, 32>}]} {
    %c0 = arith.constant 0 : index
    %c0_0 = arith.constant 0 : index
    %0 = vector.load %arg1[%c0, %c0_0] : memref<64x32xbf16, #tpu.memory_space<vmem>>, vector<64x32xbf16>
    %c0_1 = arith.constant 0 : index
    %c0_2 = arith.constant 0 : index
    %1 = vector.load %arg2[%c0_1, %c0_2] : memref<32x96xbf16, #tpu.memory_space<vmem>>, vector<32x96xbf16>
    %cst = arith.constant dense<0.000000e+00> : vector<64x96xf32>
    %2 = tpu.matmul %0, %1, %cst {dimension_numbers = #tpu.dot_dimension_numbers<[1], [0], [0], [1], [0, 0, 1, 1], [], []>} : vector<64x32xbf16>, vector<32x96xbf16>, vector<64x96xf32> -> vector<64x96xf32>
    %3 = vector.shape_cast %2 : vector<64x96xf32> to vector<8x8x96xf32>
    %cst_3 = arith.constant 0.000000e+00 : f32
    %4 = vector.broadcast %cst_3 : f32 to vector<64x32xf32>
    %5 = vector.extract_strided_slice %3 {offsets = [0, 0, 0], sizes = [8, 8, 8], strides = [1, 1, 1]} : vector<8x8x96xf32> to vector<8x8x8xf32>
    %6 = vector.extract_strided_slice %3 {offsets = [0, 0, 32], sizes = [8, 8, 8], strides = [1, 1, 1]} : vector<8x8x96xf32> to vector<8x8x8xf32>
    %7 = vector.extract_strided_slice %3 {offsets = [0, 0, 64], sizes = [8, 8, 8], strides = [1, 1, 1]} : vector<8x8x96xf32> to vector<8x8x8xf32>
    "tpu.trace_start"() <{level = 10 : i32, message = "rwd,rxd->rwx"}> : () -> ()
    %cst_4 = arith.constant dense<0.000000e+00> : vector<8x8x8xf32>
    %8 = tpu.matmul %5, %6, %cst_4 {dimension_numbers = #tpu.dot_dimension_numbers<[2], [2], [1], [1], [0, 0, 0, 1, 1, 1], [0], [0]>} : vector<8x8x8xf32>, vector<8x8x8xf32>, vector<8x8x8xf32> -> vector<8x8x8xf32>
    "tpu.trace_stop"() : () -> ()
    %cst_5 = arith.constant dense<0xFF800000> : vector<8x8xf32>
    %9 = vector.multi_reduction <maximumf>, %8, %cst_5 [2] : vector<8x8x8xf32> to vector<8x8xf32>
    %10 = vector.shape_cast %9 : vector<8x8xf32> to vector<8x8x1xf32>
    %11 = vector.broadcast %10 : vector<8x8x1xf32> to vector<8x8x8xf32>
    %12 = arith.subf %8, %11 : vector<8x8x8xf32>
    %13 = math.exp %12 : vector<8x8x8xf32>
    %cst_6 = arith.constant dense<0.000000e+00> : vector<8x8xf32>
    %14 = vector.multi_reduction <add>, %13, %cst_6 [2] : vector<8x8x8xf32> to vector<8x8xf32>
    %15 = vector.shape_cast %14 : vector<8x8xf32> to vector<8x8x1xf32>
    %16 = tpu.reciprocal %15 {approx = true} : vector<8x8x1xf32> -> vector<8x8x1xf32>
    %17 = vector.broadcast %16 : vector<8x8x1xf32> to vector<8x8x8xf32>
    %18 = arith.mulf %13, %17 : vector<8x8x8xf32>
    "tpu.trace_start"() <{level = 10 : i32, message = "rwx,rxd->rwd"}> : () -> ()
    %cst_7 = arith.constant dense<0.000000e+00> : vector<8x8x8xf32>
    %19 = tpu.matmul %18, %7, %cst_7 {dimension_numbers = #tpu.dot_dimension_numbers<[2], [1], [1], [2], [0, 0, 0, 1, 1, 2], [0], [0]>} : vector<8x8x8xf32>, vector<8x8x8xf32>, vector<8x8x8xf32> -> vector<8x8x8xf32>
    "tpu.trace_stop"() : () -> ()
    %20 = vector.shape_cast %19 : vector<8x8x8xf32> to vector<64x8xf32>
    %c0_8 = arith.constant 0 : index
    %c0_9 = arith.constant 0 : index
    %c0_10 = arith.constant 0 : index
    %21 = vector.load %arg3[%c0_8, %c0_9, %c0_10] : memref<4x8x32xbf16, #tpu.memory_space<vmem>>, vector<1x8x32xbf16>
    %22 = vector.shape_cast %21 : vector<1x8x32xbf16> to vector<8x32xbf16>
    %23 = arith.extf %22 : vector<8x32xbf16> to vector<8x32xf32>
    %cst_11 = arith.constant dense<0.000000e+00> : vector<64x32xf32>
    %24 = tpu.matmul %20, %23, %cst_11 {dimension_numbers = #tpu.dot_dimension_numbers<[1], [0], [0], [1], [0, 0, 1, 1], [], []>} : vector<64x8xf32>, vector<8x32xf32>, vector<64x32xf32> -> vector<64x32xf32>
    %25 = arith.addf %4, %24 : vector<64x32xf32>
    %26 = vector.extract_strided_slice %3 {offsets = [0, 0, 8], sizes = [8, 8, 8], strides = [1, 1, 1]} : vector<8x8x96xf32> to vector<8x8x8xf32>
    %27 = vector.extract_strided_slice %3 {offsets = [0, 0, 40], sizes = [8, 8, 8], strides = [1, 1, 1]} : vector<8x8x96xf32> to vector<8x8x8xf32>
    %28 = vector.extract_strided_slice %3 {offsets = [0, 0, 72], sizes = [8, 8, 8], strides = [1, 1, 1]} : vector<8x8x96xf32> to vector<8x8x8xf32>
    "tpu.trace_start"() <{level = 10 : i32, message = "rwd,rxd->rwx"}> : () -> ()
    %cst_12 = arith.constant dense<0.000000e+00> : vector<8x8x8xf32>
    %29 = tpu.matmul %26, %27, %cst_12 {dimension_numbers = #tpu.dot_dimension_numbers<[2], [2], [1], [1], [0, 0, 0, 1, 1, 1], [0], [0]>} : vector<8x8x8xf32>, vector<8x8x8xf32>, vector<8x8x8xf32> -> vector<8x8x8xf32>
    "tpu.trace_stop"() : () -> ()
    %cst_13 = arith.constant dense<0xFF800000> : vector<8x8xf32>
    %30 = vector.multi_reduction <maximumf>, %29, %cst_13 [2] : vector<8x8x8xf32> to vector<8x8xf32>
    %31 = vector.shape_cast %30 : vector<8x8xf32> to vector<8x8x1xf32>
    %32 = vector.broadcast %31 : vector<8x8x1xf32> to vector<8x8x8xf32>
    %33 = arith.subf %29, %32 : vector<8x8x8xf32>
    %34 = math.exp %33 : vector<8x8x8xf32>
    %cst_14 = arith.constant dense<0.000000e+00> : vector<8x8xf32>
    %35 = vector.multi_reduction <add>, %34, %cst_14 [2] : vector<8x8x8xf32> to vector<8x8xf32>
    %36 = vector.shape_cast %35 : vector<8x8xf32> to vector<8x8x1xf32>
    %37 = tpu.reciprocal %36 {approx = true} : vector<8x8x1xf32> -> vector<8x8x1xf32>
    %38 = vector.broadcast %37 : vector<8x8x1xf32> to vector<8x8x8xf32>
    %39 = arith.mulf %34, %38 : vector<8x8x8xf32>
    "tpu.trace_start"() <{level = 10 : i32, message = "rwx,rxd->rwd"}> : () -> ()
    %cst_15 = arith.constant dense<0.000000e+00> : vector<8x8x8xf32>
    %40 = tpu.matmul %39, %28, %cst_15 {dimension_numbers = #tpu.dot_dimension_numbers<[2], [1], [1], [2], [0, 0, 0, 1, 1, 2], [0], [0]>} : vector<8x8x8xf32>, vector<8x8x8xf32>, vector<8x8x8xf32> -> vector<8x8x8xf32>
    "tpu.trace_stop"() : () -> ()
    %41 = vector.shape_cast %40 : vector<8x8x8xf32> to vector<64x8xf32>
    %c1 = arith.constant 1 : index
    %c0_16 = arith.constant 0 : index
    %c0_17 = arith.constant 0 : index
    %42 = vector.load %arg3[%c1, %c0_16, %c0_17] : memref<4x8x32xbf16, #tpu.memory_space<vmem>>, vector<1x8x32xbf16>
    %43 = vector.shape_cast %42 : vector<1x8x32xbf16> to vector<8x32xbf16>
    %44 = arith.extf %43 : vector<8x32xbf16> to vector<8x32xf32>
    %cst_18 = arith.constant dense<0.000000e+00> : vector<64x32xf32>
    %45 = tpu.matmul %41, %44, %cst_18 {dimension_numbers = #tpu.dot_dimension_numbers<[1], [0], [0], [1], [0, 0, 1, 1], [], []>} : vector<64x8xf32>, vector<8x32xf32>, vector<64x32xf32> -> vector<64x32xf32>
    %46 = arith.addf %25, %45 : vector<64x32xf32>
    %47 = vector.extract_strided_slice %3 {offsets = [0, 0, 16], sizes = [8, 8, 8], strides = [1, 1, 1]} : vector<8x8x96xf32> to vector<8x8x8xf32>
    %48 = vector.extract_strided_slice %3 {offsets = [0, 0, 48], sizes = [8, 8, 8], strides = [1, 1, 1]} : vector<8x8x96xf32> to vector<8x8x8xf32>
    %49 = vector.extract_strided_slice %3 {offsets = [0, 0, 80], sizes = [8, 8, 8], strides = [1, 1, 1]} : vector<8x8x96xf32> to vector<8x8x8xf32>
    "tpu.trace_start"() <{level = 10 : i32, message = "rwd,rxd->rwx"}> : () -> ()
    %cst_19 = arith.constant dense<0.000000e+00> : vector<8x8x8xf32>
    %50 = tpu.matmul %47, %48, %cst_19 {dimension_numbers = #tpu.dot_dimension_numbers<[2], [2], [1], [1], [0, 0, 0, 1, 1, 1], [0], [0]>} : vector<8x8x8xf32>, vector<8x8x8xf32>, vector<8x8x8xf32> -> vector<8x8x8xf32>
    "tpu.trace_stop"() : () -> ()
    %cst_20 = arith.constant dense<0xFF800000> : vector<8x8xf32>
    %51 = vector.multi_reduction <maximumf>, %50, %cst_20 [2] : vector<8x8x8xf32> to vector<8x8xf32>
    %52 = vector.shape_cast %51 : vector<8x8xf32> to vector<8x8x1xf32>
    %53 = vector.broadcast %52 : vector<8x8x1xf32> to vector<8x8x8xf32>
    %54 = arith.subf %50, %53 : vector<8x8x8xf32>
    %55 = math.exp %54 : vector<8x8x8xf32>
    %cst_21 = arith.constant dense<0.000000e+00> : vector<8x8xf32>
    %56 = vector.multi_reduction <add>, %55, %cst_21 [2] : vector<8x8x8xf32> to vector<8x8xf32>
    %57 = vector.shape_cast %56 : vector<8x8xf32> to vector<8x8x1xf32>
    %58 = tpu.reciprocal %57 {approx = true} : vector<8x8x1xf32> -> vector<8x8x1xf32>
    %59 = vector.broadcast %58 : vector<8x8x1xf32> to vector<8x8x8xf32>
    %60 = arith.mulf %55, %59 : vector<8x8x8xf32>
    "tpu.trace_start"() <{level = 10 : i32, message = "rwx,rxd->rwd"}> : () -> ()
    %cst_22 = arith.constant dense<0.000000e+00> : vector<8x8x8xf32>
    %61 = tpu.matmul %60, %49, %cst_22 {dimension_numbers = #tpu.dot_dimension_numbers<[2], [1], [1], [2], [0, 0, 0, 1, 1, 2], [0], [0]>} : vector<8x8x8xf32>, vector<8x8x8xf32>, vector<8x8x8xf32> -> vector<8x8x8xf32>
    "tpu.trace_stop"() : () -> ()
    %62 = vector.shape_cast %61 : vector<8x8x8xf32> to vector<64x8xf32>
    %c2 = arith.constant 2 : index
    %c0_23 = arith.constant 0 : index
    %c0_24 = arith.constant 0 : index
    %63 = vector.load %arg3[%c2, %c0_23, %c0_24] : memref<4x8x32xbf16, #tpu.memory_space<vmem>>, vector<1x8x32xbf16>
    %64 = vector.shape_cast %63 : vector<1x8x32xbf16> to vector<8x32xbf16>
    %65 = arith.extf %64 : vector<8x32xbf16> to vector<8x32xf32>
    %cst_25 = arith.constant dense<0.000000e+00> : vector<64x32xf32>
    %66 = tpu.matmul %62, %65, %cst_25 {dimension_numbers = #tpu.dot_dimension_numbers<[1], [0], [0], [1], [0, 0, 1, 1], [], []>} : vector<64x8xf32>, vector<8x32xf32>, vector<64x32xf32> -> vector<64x32xf32>
    %67 = arith.addf %46, %66 : vector<64x32xf32>
    %68 = vector.extract_strided_slice %3 {offsets = [0, 0, 24], sizes = [8, 8, 8], strides = [1, 1, 1]} : vector<8x8x96xf32> to vector<8x8x8xf32>
    %69 = vector.extract_strided_slice %3 {offsets = [0, 0, 56], sizes = [8, 8, 8], strides = [1, 1, 1]} : vector<8x8x96xf32> to vector<8x8x8xf32>
    %70 = vector.extract_strided_slice %3 {offsets = [0, 0, 88], sizes = [8, 8, 8], strides = [1, 1, 1]} : vector<8x8x96xf32> to vector<8x8x8xf32>
    "tpu.trace_start"() <{level = 10 : i32, message = "rwd,rxd->rwx"}> : () -> ()
    %cst_26 = arith.constant dense<0.000000e+00> : vector<8x8x8xf32>
    %71 = tpu.matmul %68, %69, %cst_26 {dimension_numbers = #tpu.dot_dimension_numbers<[2], [2], [1], [1], [0, 0, 0, 1, 1, 1], [0], [0]>} : vector<8x8x8xf32>, vector<8x8x8xf32>, vector<8x8x8xf32> -> vector<8x8x8xf32>
    "tpu.trace_stop"() : () -> ()
    %cst_27 = arith.constant dense<0xFF800000> : vector<8x8xf32>
    %72 = vector.multi_reduction <maximumf>, %71, %cst_27 [2] : vector<8x8x8xf32> to vector<8x8xf32>
    %73 = vector.shape_cast %72 : vector<8x8xf32> to vector<8x8x1xf32>
    %74 = vector.broadcast %73 : vector<8x8x1xf32> to vector<8x8x8xf32>
    %75 = arith.subf %71, %74 : vector<8x8x8xf32>
    %76 = math.exp %75 : vector<8x8x8xf32>
    %cst_28 = arith.constant dense<0.000000e+00> : vector<8x8xf32>
    %77 = vector.multi_reduction <add>, %76, %cst_28 [2] : vector<8x8x8xf32> to vector<8x8xf32>
    %78 = vector.shape_cast %77 : vector<8x8xf32> to vector<8x8x1xf32>
    %79 = tpu.reciprocal %78 {approx = true} : vector<8x8x1xf32> -> vector<8x8x1xf32>
    %80 = vector.broadcast %79 : vector<8x8x1xf32> to vector<8x8x8xf32>
    %81 = arith.mulf %76, %80 : vector<8x8x8xf32>
    "tpu.trace_start"() <{level = 10 : i32, message = "rwx,rxd->rwd"}> : () -> ()
    %cst_29 = arith.constant dense<0.000000e+00> : vector<8x8x8xf32>
    %82 = tpu.matmul %81, %70, %cst_29 {dimension_numbers = #tpu.dot_dimension_numbers<[2], [1], [1], [2], [0, 0, 0, 1, 1, 2], [0], [0]>} : vector<8x8x8xf32>, vector<8x8x8xf32>, vector<8x8x8xf32> -> vector<8x8x8xf32>
    "tpu.trace_stop"() : () -> ()
    %83 = vector.shape_cast %82 : vector<8x8x8xf32> to vector<64x8xf32>
    %c3 = arith.constant 3 : index
    %c0_30 = arith.constant 0 : index
    %c0_31 = arith.constant 0 : index
    %84 = vector.load %arg3[%c3, %c0_30, %c0_31] : memref<4x8x32xbf16, #tpu.memory_space<vmem>>, vector<1x8x32xbf16>
    %85 = vector.shape_cast %84 : vector<1x8x32xbf16> to vector<8x32xbf16>
    %86 = arith.extf %85 : vector<8x32xbf16> to vector<8x32xf32>
    %cst_32 = arith.constant dense<0.000000e+00> : vector<64x32xf32>
    %87 = tpu.matmul %83, %86, %cst_32 {dimension_numbers = #tpu.dot_dimension_numbers<[1], [0], [0], [1], [0, 0, 1, 1], [], []>} : vector<64x8xf32>, vector<8x32xf32>, vector<64x32xf32> -> vector<64x32xf32>
    %88 = arith.addf %67, %87 : vector<64x32xf32>
    %c0_33 = arith.constant 0 : index
    %c0_34 = arith.constant 0 : index
    %89 = vector.load %arg4[%c0_33, %c0_34] : memref<1x32xf32, #tpu.memory_space<vmem>>, vector<1x32xf32>
    %90 = vector.broadcast %89 : vector<1x32xf32> to vector<64x32xf32>
    %91 = arith.addf %88, %90 : vector<64x32xf32>
    %c0_35 = arith.constant 0 : index
    %c0_36 = arith.constant 0 : index
    %92 = vector.load %arg5[%c0_35, %c0_36] : memref<64x32xf32, #tpu.memory_space<vmem>>, vector<64x32xf32>
    tpu.vector_store %arg5[%c0_35, %c0_36], %91 {strides = array<i32>} : memref<64x32xf32, #tpu.memory_space<vmem>>, vector<64x32xf32>,
    return
  }
  func.func @transform_0(%arg0: i32) -> (i32, i32) {
    %c0_i32 = arith.constant 0 : i32
    %c0_i32_0 = arith.constant 0 : i32
    return %arg0, %c0_i32 : i32, i32
  }
  func.func @transform_1(%arg0: i32) -> (i32, i32) {
    %c0_i32 = arith.constant 0 : i32
    %c0_i32_0 = arith.constant 0 : i32
    %c0_i32_1 = arith.constant 0 : i32
    return %c0_i32, %c0_i32_0 : i32, i32
  }
  func.func @transform_2(%arg0: i32) -> (i32, i32, i32) {
    %c0_i32 = arith.constant 0 : i32
    %c0_i32_0 = arith.constant 0 : i32
    %c0_i32_1 = arith.constant 0 : i32
    %c0_i32_2 = arith.constant 0 : i32
    return %c0_i32, %c0_i32_0, %c0_i32_1 : i32, i32, i32
  }
  func.func @transform_3(%arg0: i32) -> (i32, i32) {
    %c0_i32 = arith.constant 0 : i32
    %c0_i32_0 = arith.constant 0 : i32
    %c0_i32_1 = arith.constant 0 : i32
    return %c0_i32, %c0_i32_0 : i32, i32
  }
  func.func @transform_4(%arg0: i32) -> (i32, i32) {
    %c0_i32 = arith.constant 0 : i32
    %c0_i32_0 = arith.constant 0 : i32
    return %arg0, %c0_i32 : i32, i32
  }
}

</mosaic_0001>

<bundles_post_ra>
// kernel: tpu_custom_call.1
= control target key start
LH: loop header
LB: loop body
LE: loop exit
PB: predicated region body
PF: predicated region fallthrough
CT: control target
= control target key end

     0   :  { %s7155_s15 = smov 0   ;;  %s7961_s0 = inlined_call_operand.vmem [shape: bf16[128,32], index: 0, kind: input, shape index: {}]   ;;  %s7962_s1 = inlined_call_operand.vmem [shape: bf16[32,96], index: 1, kind: input, shape index: {}]   ;;  %s7963_s2 = inlined_call_operand.vmem [shape: bf16[4,8,32], index: 2, kind: input, shape index: {}]   ;;  %s7964_s3 = inlined_call_operand.vmem [shape: f32[1,32], index: 3, kind: input, shape index: {}]   ;;  %s7965_s4 = inlined_call_operand.vmem [shape: f32[128,32], index: 4, kind: output, shape index: {}]  }
   0x1 LB: > { %s6219_s16 = sadd.s32 4294967295, %s7115_s15   ;;  %p6223_p0 = scmp.ge.s32.totalorder %s7115_s15, 1  ;;  %s7115_s15 = sphi %s7155_s15, %s14_s15  }
   0x2   : > { %p163_p1 = scmp.lt.s32.totalorder %s7115_s15, 3 }
   0x4   : > { %p164_p2 = pnand %p6223_p0, %p163_p1 }
   0x5   : > { %v6975_v0 = vld [vmem:[%s7962_s1] sm:$0xff] (!%p164_p2)   ;;  %s6224_s19 = sshll.u32 (!%p164_p2), %s6219_s16, 3  ;;  %v6976_v1 = vld [vmem:[%s7962_s1 + $0x8] sm:$0xff] (!%p164_p2)   ;;  %vm246_vm0 = vcmask (!%p164_p2), 261120   ;;  %v7117_v6 = vmov (!%p164_p2), 0.0   ;;  %vm7118_vm1 = vmmov (!%p164_p2), 0  }
   0x6   : > { %167 = sbr.rel (%p164_p2) target bundleno = 3262 (0xcbe), region = 36  ;;  %p190_p3 = scmp.lt.s32.totalorder (!%p164_p2), %s6224_s19, 15  ;;  %6542 = vmatprep.subr.bf16.mxu0 (!%p164_p2), %v6975_v0  ;;  %6559 = vmatprep.subr.mxu1 (!%p164_p2), %v7117_v6  ;;  %vm327_vm2 = vcmask (!%p164_p2), 64512  }
   0x7   : > { %6543 = vmatpush3.bf16.msra.mxu0 (!%p164_p2), %v6975_v0  ;;  %6561 = vmatprep.mubr.msk.f32.mxu1 (!%p164_p2), %vm7118_vm1, %v7117_v6  ;;  %s7119_s26 = smov (!%p164_p2), 96   ;;  %s7120_s27 = smov (!%p164_p2), 64  }
   0x8   : > { %6544 = vmatprep.subr.bf16.mxu0 (!%p164_p2), %v6976_v1  ;;  %s7121_s28 = smov (!%p164_p2), 120   ;;  %s7122_s29 = smov (!%p164_p2), 88  }
   0x9   : > { %s7123_s30 = smov (!%p164_p2), 56   ;;  %s7124_s5 = smov (!%p164_p2), 80  }
   0xa   : > { %s7125_s6 = smov (!%p164_p2), 112   ;;  %s7126_s7 = smov (!%p164_p2), 48  }
   0xb   : > { %6545 = vmatpush3.bf16.msra.mxu0 (!%p164_p2), %v6976_v1  ;;  %s7127_s12 = smov (!%p164_p2), 104   ;;  %s7128_s13 = smov (!%p164_p2), 72  }
   0xc   : > { %6554 = vmatprep.subr.mxu0 (!%p164_p2), %v7117_v6  ;;  %s7129_s14 = smov (!%p164_p2), 40  }
   0xd   : > { %s7967_s19 = smov (!%p190_p3, %s6224_s19), 15 }
   0xe   : > { %s6225_s22 = sshll.u32 %s7967_s19, 2  ;;  %s6227_s18 = sshll.u32 %s7967_s19, 3 }
   0xf   : > { %s193_s25 = scalar_lea.vmem %s7961_s0, %s6225_s22  ;;  %s199_s24 = scalar_lea.vmem %s7965_s4, %s6227_s18 }
  0x10   : > { %v6977_v2 = vld [vmem:[%s193_s25] sm:$0xff]   ;;  %v6978_v3 = vld [vmem:[%s193_s25 + $0x8] sm:$0xff]   ;;  %v6979_v4 = vld [vmem:[%s193_s25 + $0x10] sm:$0xff]  }
  0x11   : > { %6546 = vmatprep.mubr.msk.bf16.mxu0 %vm246_vm0, %v6977_v2  ;;  %v6980_v5 = vld [vmem:[%s193_s25 + $0x18] sm:$0xff]  }
  0x12   : > { %6547 = vmatmul.mubr.msk.bf16.vlgmr.msra.gmra.mrb[0].mxu0 %vm246_vm0, %v6978_v3 }
  0x13   : > { %6550 = vmatprep.mubr.msk.bf16.mxu0 %vm246_vm0, %v6979_v4 }
  0x1a   : > { %6551 = vmatmul.mubr.msk.bf16.gmra.mrb[4].mxu0 %vm246_vm0, %v6980_v5 }
  0x1b   : > { %6556 = vmatprep.mubr.msk.f32.mxu0 %vm7118_vm1, %v7117_v6 }
  0xe5   : > { %v7185_v7 = vpop.f32.mrb[0].mxu0 }
  0xe6   : > { %v7187_v8 = vpop.f32.mrb[1].mxu0 }
  0xe7   : > { %325 = vrot.lane.b32.xlu1 %v7187_v8, %s7119_s26  ;;  %v7190_v9 = vpop.f32.mrb[2].mxu0 }
  0xe8   : > { %v7192_v10 = vpop.f32.mrb[3].mxu0 }
  0xe9   : > { %403 = vrot.lane.b32.xlu0 %v7192_v10, %s7119_s26 }
  0xeb   : > { %557 = vrot.lane.b32.xlu1 %v7190_v9, %s7119_s26 }
  0xed   : > { %480 = vrot.lane.b32.xlu0 %v7185_v7, %s7119_s26  ;;  %v7197_v11 = vpop.f32.mrb[4].mxu0 }
  0xee   : > { %v7199_v12 = vpop.f32.mrb[5].mxu0 }
  0xef   : > { %v7201_v13 = vpop.f32.mrb[6].mxu0 }
  0xf0   : > { %v7203_v14 = vpop.f32.mrb[7].mxu0  ;;  %865 = vrot.lane.b32.xlu1 %v7201_v13, %s7119_s26 }
  0xf1   : > { %711 = vrot.lane.b32.xlu0 %v7203_v14, %s7119_s26 }
  0xf4   : > { %788 = vrot.lane.b32.xlu1 %v7197_v11, %s7119_s26 }
  0xf5   : > { %634 = vrot.lane.b32.xlu0 %v7199_v12, %s7119_s26 }
 0x159   : > { %v326_v15 = vpop.permute.xlu1 %325 }
 0x15a   : > { %6555 = vmatpush3.xpose.msk.msra.mxu0 %vm327_vm2, %v326_v15 }
 0x15b   : > { %v404_v16 = vpop.permute.xlu0 %403  ;;  %6579 = vmatprep.subr.mxu0 %v7117_v6 }
 0x15c   : > { %6560 = vmatpush3.xpose.msk.msra.mxu1 %vm327_vm2, %v404_v16 }
 0x15d   : > { %6557 = vmatmul.mubr.msk.f32.vlgmr.msra.gmra.mrb[8].mxu0 %vm327_vm2, %v7187_v8  ;;  %6564 = vmatprep.subr.mxu1 %v7117_v6  ;;  %v558_v17 = vpop.permute.xlu1 %557 }
 0x15e   : > { %6581 = vmatprep.mubr.msk.f32.mxu0 %vm7118_vm1, %v7117_v6 }
 0x15f   : > { %6562 = vmatmul.mubr.msk.f32.vlgmr.msra.gmra.mrb[0].mxu1 %vm327_vm2, %v7192_v10  ;;  %v481_v18 = vpop.permute.xlu0 %480 }
 0x160   : > { %6565 = vmatpush3.xpose.msk.msra.mxu1 %vm327_vm2, %v481_v18  ;;  %6566 = vmatprep.mubr.msk.f32.mxu1 %vm7118_vm1, %v7117_v6 }
 0x161   : > { %6569 = vmatprep.subr.mxu1 %v7117_v6 }
 0x162   : > { %v866_v20 = vpop.permute.xlu1 %865 }
 0x163   : > { %6567 = vmatmul.mubr.msk.f32.vlgmr.msra.gmra.mrb[2].mxu1 %vm327_vm2, %v7185_v7  ;;  %v712_v19 = vpop.permute.xlu0 %711 }
 0x164   : > { %6570 = vmatpush3.xpose.msk.msra.mxu1 %vm327_vm2, %v558_v17  ;;  %6580 = vmatpush3.xpose.msk.msra.mxu0 %vm327_vm2, %v712_v19 }
 0x165   : > { %6571 = vmatprep.mubr.msk.f32.mxu1 %vm7118_vm1, %v7117_v6  ;;  %6574 = vmatprep.subr.mxu1 %v7117_v6 }
 0x166   : > { %6589 = vmatprep.subr.mxu0 %v7117_v6  ;;  %v789_v22 = vpop.permute.xlu1 %788 }
 0x167   : > { %6572 = vmatmul.mubr.msk.f32.vlgmr.msra.gmra.mrb[4].mxu1 %vm327_vm2, %v7190_v9  ;;  %6582 = vmatmul.mubr.msk.f32.vlgmr.msra.gmra.mrb[10].mxu0 %vm327_vm2, %v7203_v14  ;;  %v635_v21 = vpop.permute.xlu0 %634 }
 0x168   : > { %6575 = vmatpush3.xpose.msk.msra.mxu1 %vm327_vm2, %v635_v21  ;;  %6590 = vmatpush3.xpose.msk.msra.mxu0 %vm327_vm2, %v866_v20 }
 0x169   : > { %6576 = vmatprep.mubr.msk.f32.mxu1 %vm7118_vm1, %v7117_v6  ;;  %6591 = vmatprep.mubr.msk.f32.mxu0 %vm7118_vm1, %v7117_v6 }
 0x16a   : > { %6584 = vmatprep.subr.mxu1 %v7117_v6  ;;  %6599 = vmatprep.subr.mxu0 %v7117_v6 }
 0x16b   : > { %6577 = vmatmul.mubr.msk.f32.vlgmr.msra.gmra.mrb[6].mxu1 %vm327_vm2, %v7199_v12  ;;  %6592 = vmatmul.mubr.msk.f32.vlgmr.msra.gmra.mrb[12].mxu0 %vm327_vm2, %v7201_v13 }
 0x16c   : > { %6585 = vmatpush3.xpose.msk.msra.mxu1 %vm327_vm2, %v789_v22  ;;  %6586 = vmatprep.mubr.msk.f32.mxu1 %vm7118_vm1, %v7117_v6 }
 0x16d   : > { %6601 = vmatprep.mubr.msk.f32.mxu0 %vm7118_vm1, %v7117_v6  ;;  %6594 = vmatprep.subr.mxu1 %v7117_v6 }
 0x16f   : > { %6587 = vmatmul.mubr.msk.f32.vlgmr.msra.gmra.mrb[8].mxu1 %vm327_vm2, %v7197_v11 }
 0x170   : > { %6596 = vmatprep.mubr.msk.f32.mxu1 %vm7118_vm1, %v7117_v6 }
 0x230   : > { %v7257_v23 = vpop.f32.mrb[8].mxu0 }
 0x231   : > { %v6558_v24 = vpop.f32.mrb[9].mxu0  ;;  %v941_v1 = vsel %vm327_vm2, %v7257_v23, -inf }
 0x232   : > { %v475_v25 = vpop.f32.mrb[0].mxu1 }
 0x233   : > { %v6563_v26 = vpop.f32.mrb[1].mxu1  ;;  %v944_v27 = vsel %vm327_vm2, %v475_v25, -inf }
 0x234   : > { %945 = vmax.xlane.f32.xlu0 %v944_v27 }
 0x236   : > { %v7260_v28 = vpop.f32.mrb[2].mxu1 }
 0x237   : > { %v6568_v29 = vpop.f32.mrb[3].mxu1  ;;  %v947_v0 = vsel %vm327_vm2, %v7260_v28, -inf }
 0x23a   : > { %v629_v30 = vpop.f32.mrb[4].mxu1  ;;  %v783_v31 = vpop.f32.mrb[10].mxu0 }
 0x23b   : > { %v6573_v32 = vpop.f32.mrb[5].mxu1  ;;  %v6583_v33 = vpop.f32.mrb[11].mxu0  ;;  %v950_v34 = vsel %vm327_vm2, %v629_v30, -inf  ;;  %v956_v35 = vsel %vm327_vm2, %v783_v31, -inf }
 0x23c   : > { %951 = vmax.xlane.f32.xlu1 %v950_v34  ;;  %957 = vmax.xlane.f32.xlu0 %v956_v35 }
 0x23e   : > { %v7264_v36 = vpop.f32.mrb[6].mxu1  ;;  %v937_v37 = vpop.f32.mrb[12].mxu0 }
 0x23f   : > { %v6578_v38 = vpop.f32.mrb[7].mxu1  ;;  %v6593_v39 = vpop.f32.mrb[13].mxu0  ;;  %v962_v40 = vsel %vm327_vm2, %v937_v37, -inf  ;;  %v953_v2 = vsel %vm327_vm2, %v7264_v36, -inf }
 0x240   : > { %963 = vmax.xlane.f32.xlu0 %v962_v40 }
 0x242   : > { %v7267_v41 = vpop.f32.mrb[8].mxu1 }
 0x243   : > { %v6588_v42 = vpop.f32.mrb[9].mxu1  ;;  %v959_v3 = vsel %vm327_vm2, %v7267_v41, -inf }
 0x24d   : > { %1105 = vrot.lane.b32.xlu1 %v7192_v10, %s7120_s27 }
 0x2c1   : > { %v946_v43 = vpop.xlane.xlu0 %945 }
 0x2c2   : > { %v966_v44 = vsub.f32 %v475_v25, %v946_v43 }
 0x2c4   : > { %v975_v45 = vmul.f32 1.442695, %v966_v44 }
 0x2c6   : > { %6981 = vpow2.f32 %v975_v45 }
 0x2c9   : > { %v952_v46 = vpop.xlane.xlu1 %951  ;;  %v958_v54 = vpop.xlane.xlu0 %957 }
 0x2ca   : > { %v968_v47 = vsub.f32 %v629_v30, %v952_v46  ;;  %v970_v55 = vsub.f32 %v783_v31, %v958_v54 }
 0x2cc   : > { %v979_v48 = vmul.f32 1.442695, %v968_v47  ;;  %v983_v56 = vmul.f32 1.442695, %v970_v55 }
 0x2cd   : > { %v1106_v49 = vpop.permute.xlu1 %1105  ;;  %v964_v57 = vpop.xlane.xlu0 %963 }
 0x2ce   : > { %6983 = vpow2.f32 %v979_v48  ;;  %6600 = vmatpush3.msra.mxu0 %v1106_v49  ;;  %v972_v58 = vsub.f32 %v937_v37, %v964_v57 }
 0x2cf   : > { %6609 = vmatprep.subr.mxu0 %v7117_v6  ;;  %6985 = vpow2.f32 %v983_v56 }
 0x2d0   : > { %v6982_v50 = vpop.eup %6981  ;;  %v987_v59 = vmul.f32 1.442695, %v972_v58 }
 0x2d1   : > { %v992_v51 = vsel %vm327_vm2, %v6982_v50, 0.0 }
 0x2d2   : > { %993 = vadd.xlane.f32.xlu1 %v992_v51  ;;  %6987 = vpow2.f32 %v987_v59 }
 0x2d8   : > { %v6984_v52 = vpop.eup %6983 }
 0x2d9   : > { %v998_v53 = vsel %vm327_vm2, %v6984_v52, 0.0  ;;  %v6986_v60 = vpop.eup %6985 }
 0x2da   : > { %999 = vadd.xlane.f32.xlu0 %v998_v53  ;;  %v1004_v61 = vsel %vm327_vm2, %v6986_v60, 0.0 }
 0x2dc   : > { %v6988_v62 = vpop.eup %6987 }
 0x2dd   : > { %v1010_v63 = vsel %vm327_vm2, %v6988_v62, 0.0 }
 0x2e3   : > { %1409 = vrot.lane.b32.xlu1 %v7203_v14, %s7120_s27 }
 0x2f0   : > { %1257 = vrot.lane.b32.xlu0 %v7190_v9, %s7120_s27 }
 0x307   : > { %1005 = vadd.xlane.f32.xlu1 %v1004_v61 }
 0x30f   : > { %1011 = vadd.xlane.f32.xlu0 %v1010_v63 }
 0x318   : > { %1561 = vrot.lane.b32.xlu1 %v7201_v13, %s7120_s27 }
 0x31c   : > { %1717 = vrot.lane.b32.xlu1 %v7192_v10, %s7121_s28 }
 0x320   : > { %1873 = vrot.lane.b32.xlu1 %v7190_v9, %s7121_s28 }
 0x324   : > { %2029 = vrot.lane.b32.xlu1 %v7203_v14, %s7121_s28 }
 0x325   : > { %1719 = vrot.lane.b32.xlu0 %v7192_v10, %s7122_s29 }
 0x328   : > { %2185 = vrot.lane.b32.xlu1 %v7201_v13, %s7121_s28 }
 0x329   : > { %1875 = vrot.lane.b32.xlu0 %v7190_v9, %s7122_s29 }
 0x32d   : > { %2031 = vrot.lane.b32.xlu0 %v7203_v14, %s7122_s29 }
 0x331   : > { %2187 = vrot.lane.b32.xlu0 %v7201_v13, %s7122_s29 }
 0x34c   : > { %948 = vmax.xlane.f32.xlu1 %v947_v0 }
 0x350   : > { %942 = vmax.xlane.f32.xlu0 %v941_v1 }
 0x354   : > { %954 = vmax.xlane.f32.xlu0 %v953_v2 }
 0x358   : > { %960 = vmax.xlane.f32.xlu0 %v959_v3 }
 0x35f   : > { %v994_v4 = vpop.xlane.xlu1 %993 }
 0x360   : > { %6989 = vrcp.f32 %v994_v4 }
 0x363   : > { %v1410_v20 = vpop.permute.xlu1 %1409 }
 0x367   : > { %v1000_v5 = vpop.xlane.xlu0 %999 }
 0x368   : > { %6991 = vrcp.f32 %v1000_v5 }
 0x36a   : > { %v6990_v15 = vpop.eup %6989 }
 0x36b   : > { %v1258_v16 = vpop.permute.xlu0 %1257  ;;  %v1022_v17 = vmul.f32 %v6990_v15, %v6982_v50 }
 0x36d   : > { %6602 = vmatmul.mubr.msk.f32.vlgmr.msra.gmra.mrb[14].mxu0 %vm327_vm2, %v1022_v17 }
 0x36e   : > { %6610 = vmatpush3.msra.mxu0 %v1258_v16  ;;  %6611 = vmatprep.mubr.msk.f32.mxu0 %vm7118_vm1, %v7117_v6 }
 0x36f   : > { %6619 = vmatprep.subr.mxu0 %v7117_v6 }
 0x372   : > { %v6992_v18 = vpop.eup %6991 }
 0x373   : > { %v1024_v19 = vmul.f32 %v6992_v18, %v6984_v52 }
 0x375   : > { %6612 = vmatmul.mubr.msk.f32.vlgmr.msra.gmra.mrb[16].mxu0 %vm327_vm2, %v1024_v19 }
 0x376   : > { %6620 = vmatpush3.msra.mxu0 %v1410_v20  ;;  %6621 = vmatprep.mubr.msk.f32.mxu0 %vm7118_vm1, %v7117_v6 }
 0x377   : > { %6629 = vmatprep.subr.mxu0 %v7117_v6 }
 0x394   : > { %v1006_v21 = vpop.xlane.xlu1 %1005 }
 0x395   : > { %6993 = vrcp.f32 %v1006_v21 }
 0x398   : > { %v1562_v26 = vpop.permute.xlu1 %1561 }
 0x39c   : > { %v1012_v22 = vpop.xlane.xlu0 %1011  ;;  %v1718_v30 = vpop.permute.xlu1 %1717 }
 0x39d   : > { %6995 = vrcp.f32 %v1012_v22 }
 0x39f   : > { %v6994_v24 = vpop.eup %6993 }
 0x3a0   : > { %v1026_v25 = vmul.f32 %v6994_v24, %v6986_v60  ;;  %v1720_v27 = vpop.permute.xlu0 %1719  ;;  %v1874_v33 = vpop.permute.xlu1 %1873 }
 0x3a2   : > { %6622 = vmatmul.mubr.msk.f32.vlgmr.msra.gmra.mrb[18].mxu0 %vm327_vm2, %v1026_v25 }
 0x3a3   : > { %6630 = vmatpush3.msra.mxu0 %v1562_v26  ;;  %6631 = vmatprep.mubr.msk.f32.mxu0 %vm7118_vm1, %v7117_v6 }
 0x3a4   : > { %6639 = vmatprep.subr.mxu0 %v7117_v6  ;;  %v1876_v32 = vpop.permute.xlu0 %1875  ;;  %v2030_v35 = vpop.permute.xlu1 %2029 }
 0x3a7   : > { %v6996_v29 = vpop.eup %6995 }
 0x3a8   : > { %v1028_v31 = vmul.f32 %v6996_v29, %v6988_v62  ;;  %v2032_v34 = vpop.permute.xlu0 %2031  ;;  %v2186_v38 = vpop.permute.xlu1 %2185 }
 0x3aa   : > { %6632 = vmatmul.mubr.msk.f32.vlgmr.msra.gmra.mrb[20].mxu0 %vm327_vm2, %v1028_v31 }
 0x3ab   : > { %6640 = vmatpush3.xpose.msk.msra.mxu0 %vm327_vm2, %v1720_v27  ;;  %6641 = vmatprep.mubr.msk.f32.mxu0 %vm7118_vm1, %v7117_v6 }
 0x3ac   : > { %6649 = vmatprep.subr.mxu0 %v7117_v6  ;;  %v2188_v37 = vpop.permute.xlu0 %2187 }
 0x3ae   : > { %6642 = vmatmul.mubr.msk.f32.vlgmr.msra.gmra.mrb[22].mxu0 %vm327_vm2, %v1718_v30 }
 0x3af   : > { %6650 = vmatpush3.xpose.msk.msra.mxu0 %vm327_vm2, %v1876_v32  ;;  %6651 = vmatprep.mubr.msk.f32.mxu0 %vm7118_vm1, %v7117_v6 }
 0x3b0   : > { %6659 = vmatprep.subr.mxu0 %v7117_v6 }
 0x3b2   : > { %6652 = vmatmul.mubr.msk.f32.vlgmr.msra.gmra.mrb[24].mxu0 %vm327_vm2, %v1874_v33 }
 0x3b3   : > { %6660 = vmatpush3.xpose.msk.msra.mxu0 %vm327_vm2, %v2032_v34  ;;  %6661 = vmatprep.mubr.msk.f32.mxu0 %vm7118_vm1, %v7117_v6 }
 0x3b4   : > { %6669 = vmatprep.subr.mxu0 %v7117_v6 }
 0x3b6   : > { %6662 = vmatmul.mubr.msk.f32.vlgmr.msra.gmra.mrb[26].mxu0 %vm327_vm2, %v2030_v35 }
 0x3b7   : > { %6670 = vmatpush3.xpose.msk.msra.mxu0 %vm327_vm2, %v2188_v37  ;;  %6671 = vmatprep.mubr.msk.f32.mxu0 %vm7118_vm1, %v7117_v6 }
 0x3b8   : > { %6679 = vmatprep.subr.mxu0 %v7117_v6 }
 0x3ba   : > { %6672 = vmatmul.mubr.msk.f32.vlgmr.msra.gmra.mrb[28].mxu0 %vm327_vm2, %v2186_v38 }
 0x3bb   : > { %6681 = vmatprep.mubr.msk.f32.mxu0 %vm7118_vm1, %v7117_v6 }
 0x3d9   : > { %v949_v39 = vpop.xlane.xlu1 %948 }
 0x3da   : > { %v967_v40 = vsub.f32 %v7260_v28, %v949_v39 }
 0x3dc   : > { %v977_v42 = vmul.f32 1.442695, %v967_v40 }
 0x3dd   : > { %v943_v43 = vpop.xlane.xlu0 %942 }
 0x3de   : > { %6997 = vpow2.f32 %v977_v42  ;;  %v965_v44 = vsub.f32 %v7257_v23, %v943_v43 }
 0x3e0   : > { %v973_v45 = vmul.f32 1.442695, %v965_v44 }
 0x3e1   : > { %v955_v28 = vpop.xlane.xlu0 %954 }
 0x3e2   : > { %6999 = vpow2.f32 %v973_v45  ;;  %v969_v52 = vsub.f32 %v7264_v36, %v955_v28 }
 0x3e4   : > { %v981_v53 = vmul.f32 1.442695, %v969_v52 }
 0x3e5   : > { %v961_v23 = vpop.xlane.xlu0 %960 }
 0x3e6   : > { %v971_v50 = vsub.f32 %v7267_v41, %v961_v23 }
 0x3e8   : > { %v7343_v46 = vpop.eup %6997  ;;  %v985_v51 = vmul.f32 1.442695, %v971_v50 }
 0x3e9   : > { %v995_v47 = vsel %vm327_vm2, %v7343_v46, 0.0 }
 0x3ea   : > { %996 = vadd.xlane.f32.xlu0 %v995_v47  ;;  %7001 = vpow2.f32 %v985_v51 }
 0x3eb   : > { %7003 = vpow2.f32 %v981_v53 }
 0x3ec   : > { %v7000_v48 = vpop.eup %6999 }
 0x3ed   : > { %v989_v49 = vsel %vm327_vm2, %v7000_v48, 0.0 }
 0x3ee   : > { %990 = vadd.xlane.f32.xlu1 %v989_v49 }
 0x3f4   : > { %v7356_v54 = vpop.eup %7001 }
 0x3f5   : > { %v1007_v55 = vsel %vm327_vm2, %v7356_v54, 0.0  ;;  %v7360_v56 = vpop.eup %7003 }
 0x3f6   : > { %v1001_v57 = vsel %vm327_vm2, %v7360_v56, 0.0 }
 0x3ff   : > { %1029 = vrot.lane.b32.xlu1 %v7187_v8, %s7120_s27 }
 0x400   : > { %1181 = vrot.lane.b32.xlu0 %v7185_v7, %s7120_s27 }
 0x403   : > { %1333 = vrot.lane.b32.xlu1 %v7199_v12, %s7120_s27 }
 0x41f   : > { %1008 = vadd.xlane.f32.xlu0 %v1007_v55 }
 0x427   : > { %1002 = vadd.xlane.f32.xlu1 %v1001_v57 }
 0x435   : > { %1641 = vrot.lane.b32.xlu0 %v7187_v8, %s7122_s29 }
 0x438   : > { %1485 = vrot.lane.b32.xlu1 %v7197_v11, %s7120_s27 }
 0x439   : > { %1797 = vrot.lane.b32.xlu0 %v7185_v7, %s7122_s29 }
 0x43c   : > { %1639 = vrot.lane.b32.xlu1 %v7187_v8, %s7121_s28 }
 0x43d   : > { %1953 = vrot.lane.b32.xlu0 %v7199_v12, %s7122_s29 }
 0x440   : > { %1795 = vrot.lane.b32.xlu1 %v7185_v7, %s7121_s28  ;;  %v7376_v36 = vpop.f32.mrb[14].mxu0 }
 0x441   : > { %2109 = vrot.lane.b32.xlu0 %v7197_v11, %s7122_s29  ;;  %v6603_v41 = vpop.f32.mrb[15].mxu0 }
 0x444   : > { %1951 = vrot.lane.b32.xlu1 %v7199_v12, %s7121_s28 }
 0x448   : > { %2107 = vrot.lane.b32.xlu1 %v7197_v11, %s7121_s28  ;;  %v7384_v58 = vpop.f32.mrb[16].mxu0 }
 0x449   : > { %v6613_v59 = vpop.f32.mrb[17].mxu0 }
 0x475   : > { %v7386_v60 = vpop.f32.mrb[18].mxu0 }
 0x476   : > { %v6623_v61 = vpop.f32.mrb[19].mxu0 }
 0x477   : > { %v997_v62 = vpop.xlane.xlu0 %996 }
 0x47b   : > { %v991_v63 = vpop.xlane.xlu1 %990  ;;  %v1182_v21 = vpop.permute.xlu0 %1181 }
 0x47c   : > { %7005 = vrcp.f32 %v991_v63 }
 0x47d   : > { %v7388_v0 = vpop.f32.mrb[20].mxu0  ;;  %7007 = vrcp.f32 %v997_v62 }
 0x47e   : > { %v6633_v1 = vpop.f32.mrb[21].mxu0 }
 0x47f   : > { %v1030_v2 = vpop.permute.xlu1 %1029 }
 0x480   : > { %6595 = vmatpush3.msra.mxu1 %v1030_v2 }
 0x481   : > { %v7390_v3 = vpop.f32.mrb[22].mxu0  ;;  %6604 = vmatprep.subr.mxu1 %v7117_v6 }
 0x482   : > { %v6643_v4 = vpop.f32.mrb[23].mxu0  ;;  %v2266_v5 = vsel %vm327_vm2, %v7390_v3, -inf }
 0x483   : > { %2267 = vmax.xlane.f32.xlu0 %v2266_v5  ;;  %v1334_v27 = vpop.permute.xlu1 %1333 }
 0x485   : > { %v7395_v15 = vpop.f32.mrb[24].mxu0 }
 0x486   : > { %v7006_v16 = vpop.eup %7005  ;;  %v6653_v17 = vpop.f32.mrb[25].mxu0  ;;  %v2272_v18 = vsel %vm327_vm2, %v7395_v15, -inf }
 0x487   : > { %2273 = vmax.xlane.f32.xlu1 %v2272_v18  ;;  %v1021_v19 = vmul.f32 %v7006_v16, %v7000_v48  ;;  %v7008_v20 = vpop.eup %7007 }
 0x488   : > { %v1023_v26 = vmul.f32 %v7008_v20, %v7343_v46 }
 0x489   : > { %6597 = vmatmul.mubr.msk.f32.vlgmr.msra.gmra.mrb[10].mxu1 %vm327_vm2, %v1021_v19  ;;  %v7400_v22 = vpop.f32.mrb[26].mxu0 }
 0x48a   : > { %6605 = vmatpush3.msra.mxu1 %v1182_v21  ;;  %v6663_v24 = vpop.f32.mrb[27].mxu0  ;;  %v2278_v25 = vsel %vm327_vm2, %v7400_v22, -inf  ;;  %6606 = vmatprep.mubr.msk.f32.mxu1 %vm7118_vm1, %v7117_v6 }
 0x48b   : > { %2279 = vmax.xlane.f32.xlu0 %v2278_v25  ;;  %6614 = vmatprep.subr.mxu1 %v7117_v6 }
 0x48d   : > { %6607 = vmatmul.mubr.msk.f32.vlgmr.msra.gmra.mrb[12].mxu1 %vm327_vm2, %v1023_v26  ;;  %v7409_v29 = vpop.f32.mrb[28].mxu0 }
 0x48e   : > { %6615 = vmatpush3.msra.mxu1 %v1334_v27  ;;  %v6673_v30 = vpop.f32.mrb[29].mxu0  ;;  %v2284_v31 = vsel %vm327_vm2, %v7409_v29, -inf  ;;  %6616 = vmatprep.mubr.msk.f32.mxu1 %vm7118_vm1, %v7117_v6 }
 0x48f   : > { %2285 = vmax.xlane.f32.xlu0 %v2284_v31  ;;  %6624 = vmatprep.subr.mxu1 %v7117_v6 }
 0x498   : > { %2427 = vrot.lane.b32.xlu1 %v7192_v10, %s7123_s30 }
 0x49c   : > { %2731 = vrot.lane.b32.xlu1 %v7203_v14, %s7123_s30 }
 0x4a5   : > { %2579 = vrot.lane.b32.xlu0 %v7190_v9, %s7123_s30 }
 0x4ac   : > { %v1009_v32 = vpop.xlane.xlu0 %1008 }
 0x4b0   : > { %v1642_v39 = vpop.permute.xlu0 %1641 }
 0x4b4   : > { %v1003_v33 = vpop.xlane.xlu1 %1002  ;;  %v1798_v43 = vpop.permute.xlu0 %1797 }
 0x4b5   : > { %7009 = vrcp.f32 %v1003_v33 }
 0x4b6   : > { %7011 = vrcp.f32 %v1009_v32 }
 0x4b8   : > { %v1486_v35 = vpop.permute.xlu1 %1485  ;;  %v1954_v45 = vpop.permute.xlu0 %1953 }
 0x4bc   : > { %v1640_v42 = vpop.permute.xlu1 %1639  ;;  %v2110_v47 = vpop.permute.xlu0 %2109 }
 0x4bf   : > { %v7010_v34 = vpop.eup %7009 }
 0x4c0   : > { %v1025_v37 = vmul.f32 %v7010_v34, %v7360_v56  ;;  %v7012_v38 = vpop.eup %7011  ;;  %v1796_v44 = vpop.permute.xlu1 %1795 }
 0x4c1   : > { %v1027_v40 = vmul.f32 %v7012_v38, %v7356_v54 }
 0x4c2   : > { %6617 = vmatmul.mubr.msk.f32.vlgmr.msra.gmra.mrb[14].mxu1 %vm327_vm2, %v1025_v37 }
 0x4c3   : > { %6625 = vmatpush3.msra.mxu1 %v1486_v35  ;;  %6626 = vmatprep.mubr.msk.f32.mxu1 %vm7118_vm1, %v7117_v6 }
 0x4c4   : > { %6634 = vmatprep.subr.mxu1 %v7117_v6  ;;  %v1952_v46 = vpop.permute.xlu1 %1951 }
 0x4c6   : > { %6627 = vmatmul.mubr.msk.f32.vlgmr.msra.gmra.mrb[16].mxu1 %vm327_vm2, %v1027_v40 }
 0x4c7   : > { %6636 = vmatprep.mubr.msk.f32.mxu1 %vm7118_vm1, %v7117_v6 }
 0x4c8   : > { %v2108_v48 = vpop.permute.xlu1 %2107 }
 0x4ca   : > { %6635 = vmatpush3.xpose.msk.msra.mxu1 %vm327_vm2, %v1642_v39 }
 0x4cb   : > { %6644 = vmatprep.subr.mxu1 %v7117_v6 }
 0x4cd   : > { %6637 = vmatmul.mubr.msk.f32.vlgmr.msra.gmra.mrb[18].mxu1 %vm327_vm2, %v1640_v42 }
 0x4ce   : > { %6645 = vmatpush3.xpose.msk.msra.mxu1 %vm327_vm2, %v1798_v43  ;;  %6646 = vmatprep.mubr.msk.f32.mxu1 %vm7118_vm1, %v7117_v6 }
 0x4cf   : > { %6654 = vmatprep.subr.mxu1 %v7117_v6 }
 0x4d1   : > { %6647 = vmatmul.mubr.msk.f32.vlgmr.msra.gmra.mrb[20].mxu1 %vm327_vm2, %v1796_v44 }
 0x4d2   : > { %6655 = vmatpush3.xpose.msk.msra.mxu1 %vm327_vm2, %v1954_v45  ;;  %6656 = vmatprep.mubr.msk.f32.mxu1 %vm7118_vm1, %v7117_v6 }
 0x4d3   : > { %6664 = vmatprep.subr.mxu1 %v7117_v6 }
 0x4d5   : > { %6657 = vmatmul.mubr.msk.f32.vlgmr.msra.gmra.mrb[22].mxu1 %vm327_vm2, %v1952_v46 }
 0x4d6   : > { %6665 = vmatpush3.xpose.msk.msra.mxu1 %vm327_vm2, %v2110_v47  ;;  %6666 = vmatprep.mubr.msk.f32.mxu1 %vm7118_vm1, %v7117_v6 }
 0x4d7   : > { %6674 = vmatprep.subr.mxu1 %v7117_v6 }
 0x4d9   : > { %6667 = vmatmul.mubr.msk.f32.vlgmr.msra.gmra.mrb[24].mxu1 %vm327_vm2, %v2108_v48 }
 0x4da   : > { %6676 = vmatprep.mubr.msk.f32.mxu1 %vm7118_vm1, %v7117_v6 }
 0x510   : > { %v2268_v49 = vpop.xlane.xlu0 %2267 }
 0x511   : > { %v2288_v28 = vsub.f32 %v7390_v3, %v2268_v49 }
 0x513   : > { %v2297_v23 = vmul.f32 1.442695, %v2288_v28 }
 0x514   : > { %v2274_v50 = vpop.xlane.xlu1 %2273 }
 0x515   : > { %7013 = vpow2.f32 %v2297_v23  ;;  %v2290_v51 = vsub.f32 %v7395_v15, %v2274_v50 }
 0x517   : > { %v2301_v52 = vmul.f32 1.442695, %v2290_v51 }
 0x518   : > { %v2428_v53 = vpop.permute.xlu1 %2427  ;;  %v2280_v54 = vpop.xlane.xlu0 %2279 }
 0x519   : > { %7015 = vpow2.f32 %v2301_v52  ;;  %v2292_v55 = vsub.f32 %v7400_v22, %v2280_v54  ;;  %6680 = vmatpush3.msra.mxu0 %v2428_v53 }
 0x51a   : > { %6689 = vmatprep.subr.mxu0 %v7117_v6 }
 0x51b   : > { %v2305_v56 = vmul.f32 1.442695, %v2292_v55 }
 0x51c   : > { %v2286_v1 = vpop.xlane.xlu0 %2285  ;;  %v2732_v33 = vpop.permute.xlu1 %2731 }
 0x51d   : > { %7017 = vpow2.f32 %v2305_v56  ;;  %v2294_v2 = vsub.f32 %v7409_v29, %v2286_v1 }
 0x51f   : > { %v7455_v57 = vpop.eup %7013  ;;  %v2309_v3 = vmul.f32 1.442695, %v2294_v2 }
 0x520   : > { %v2314_v41 = vsel %vm327_vm2, %v7455_v57, 0.0  ;;  %v2580_v38 = vpop.permute.xlu0 %2579 }
 0x521   : > { %2315 = vadd.xlane.f32.xlu1 %v2314_v41  ;;  %7019 = vpow2.f32 %v2309_v3 }
 0x523   : > { %v7459_v59 = vpop.eup %7015 }
 0x524   : > { %v2320_v61 = vsel %vm327_vm2, %v7459_v59, 0.0 }
 0x525   : > { %2321 = vadd.xlane.f32.xlu0 %v2320_v61 }
 0x527   : > { %v7463_v62 = vpop.eup %7017 }
 0x528   : > { %v2326_v63 = vsel %vm327_vm2, %v7463_v62, 0.0 }
 0x529   : > { %2327 = vadd.xlane.f32.xlu1 %v2326_v63 }
 0x52b   : > { %v7479_v4 = vpop.eup %7019 }
 0x52c   : > { %v2332_v16 = vsel %vm327_vm2, %v7479_v4, 0.0 }
 0x53a   : > { %2883 = vrot.lane.b32.xlu1 %v7201_v13, %s7123_s30 }
 0x53b   : > { %3222 = vrot.lane.b32.xlu0 %v7187_v8, %s7124_s5 }
 0x53e   : > { %3220 = vrot.lane.b32.xlu1 %v7187_v8, %s7125_s6 }
 0x53f   : > { %3300 = vrot.lane.b32.xlu0 %v7192_v10, %s7124_s5 }
 0x542   : > { %3298 = vrot.lane.b32.xlu1 %v7192_v10, %s7125_s6 }
 0x546   : > { %3376 = vrot.lane.b32.xlu1 %v7185_v7, %s7125_s6 }
 0x54a   : > { %3454 = vrot.lane.b32.xlu1 %v7190_v9, %s7125_s6 }
 0x54e   : > { %3532 = vrot.lane.b32.xlu1 %v7199_v12, %s7125_s6 }
 0x552   : > { %3610 = vrot.lane.b32.xlu1 %v7203_v14, %s7125_s6 }
 0x556   : > { %3688 = vrot.lane.b32.xlu1 %v7197_v11, %s7125_s6 }
 0x55a   : > { %3766 = vrot.lane.b32.xlu1 %v7201_v13, %s7125_s6 }
 0x55c   : > { %v7482_v5 = vpop.f32.mrb[10].mxu1 }
 0x55d   : > { %v6598_v15 = vpop.f32.mrb[11].mxu1 }
 0x55e   : > { %2333 = vadd.xlane.f32.xlu0 %v2332_v16 }
 0x560   : > { %v7486_v17 = vpop.f32.mrb[12].mxu1 }
 0x561   : > { %v6608_v18 = vpop.f32.mrb[13].mxu1 }
 0x574   : > { %3378 = vrot.lane.b32.xlu0 %v7185_v7, %s7124_s5 }
 0x578   : > { %3456 = vrot.lane.b32.xlu0 %v7190_v9, %s7124_s5 }
 0x57c   : > { %3534 = vrot.lane.b32.xlu0 %v7199_v12, %s7124_s5 }
 0x580   : > { %3612 = vrot.lane.b32.xlu0 %v7203_v14, %s7124_s5 }
 0x584   : > { %3690 = vrot.lane.b32.xlu0 %v7197_v11, %s7124_s5 }
 0x588   : > { %3768 = vrot.lane.b32.xlu0 %v7201_v13, %s7124_s5 }
 0x595   : > { %v7494_v19 = vpop.f32.mrb[14].mxu1 }
 0x596   : > { %v6618_v20 = vpop.f32.mrb[15].mxu1 }
 0x599   : > { %v7496_v21 = vpop.f32.mrb[16].mxu1 }
 0x59a   : > { %v6628_v22 = vpop.f32.mrb[17].mxu1 }
 0x5a0   : > { %v7498_v24 = vpop.f32.mrb[18].mxu1 }
 0x5a1   : > { %v6638_v25 = vpop.f32.mrb[19].mxu1  ;;  %v2263_v30 = vsel %vm327_vm2, %v7498_v24, -inf }
 0x5a4   : > { %v7500_v26 = vpop.f32.mrb[20].mxu1 }
 0x5a5   : > { %v6648_v27 = vpop.f32.mrb[21].mxu1  ;;  %v2269_v29 = vsel %vm327_vm2, %v7500_v26, -inf }
 0x5a6   : > { %2270 = vmax.xlane.f32.xlu1 %v2269_v29 }
 0x5a7   : > { %2264 = vmax.xlane.f32.xlu0 %v2263_v30 }
 0x5a8   : > { %v7506_v31 = vpop.f32.mrb[22].mxu1 }
 0x5a9   : > { %v6658_v32 = vpop.f32.mrb[23].mxu1  ;;  %v2275_v34 = vsel %vm327_vm2, %v7506_v31, -inf }
 0x5ab   : > { %2276 = vmax.xlane.f32.xlu0 %v2275_v34 }
 0x5ac   : > { %v7510_v35 = vpop.f32.mrb[24].mxu1 }
 0x5ad   : > { %v6668_v37 = vpop.f32.mrb[25].mxu1  ;;  %v2281_v40 = vsel %vm327_vm2, %v7510_v35, -inf }
 0x5ae   : > { %v2316_v39 = vpop.xlane.xlu1 %2315 }
 0x5af   : > { %7021 = vrcp.f32 %v2316_v39  ;;  %2282 = vmax.xlane.f32.xlu0 %v2281_v40 }
 0x5b2   : > { %v2322_v42 = vpop.xlane.xlu0 %2321 }
 0x5b3   : > { %7023 = vrcp.f32 %v2322_v42 }
 0x5b6   : > { %v2328_v43 = vpop.xlane.xlu1 %2327  ;;  %v3223_v23 = vpop.permute.xlu0 %3222 }
 0x5b7   : > { %7025 = vrcp.f32 %v2328_v43 }
 0x5b9   : > { %v7022_v44 = vpop.eup %7021 }
 0x5ba   : > { %v2344_v45 = vmul.f32 %v7022_v44, %v7455_v57  ;;  %v2884_v28 = vpop.permute.xlu1 %2883  ;;  %v3301_v50 = vpop.permute.xlu0 %3300 }
 0x5bc   : > { %6682 = vmatmul.mubr.msk.f32.vlgmr.msra.gmra.mrb[30].mxu0 %vm327_vm2, %v2344_v45 }
 0x5bd   : > { %v7024_v46 = vpop.eup %7023  ;;  %6690 = vmatpush3.msra.mxu0 %v2580_v38  ;;  %6691 = vmatprep.mubr.msk.f32.mxu0 %vm7118_vm1, %v7117_v6 }
 0x5be   : > { %v2346_v47 = vmul.f32 %v7024_v46, %v7459_v59  ;;  %6699 = vmatprep.subr.mxu0 %v7117_v6  ;;  %v3221_v52 = vpop.permute.xlu1 %3220 }
 0x5c0   : > { %6692 = vmatmul.mubr.msk.f32.vlgmr.msra.gmra.mrb[32].mxu0 %vm327_vm2, %v2346_v47 }
 0x5c1   : > { %v7026_v48 = vpop.eup %7025  ;;  %6700 = vmatpush3.msra.mxu0 %v2732_v33  ;;  %6701 = vmatprep.mubr.msk.f32.mxu0 %vm7118_vm1, %v7117_v6 }
 0x5c2   : > { %v2348_v49 = vmul.f32 %v7026_v48, %v7463_v62  ;;  %6709 = vmatprep.subr.mxu0 %v7117_v6  ;;  %v3299_v53 = vpop.permute.xlu1 %3298 }
 0x5c4   : > { %6702 = vmatmul.mubr.msk.f32.vlgmr.msra.gmra.mrb[34].mxu0 %vm327_vm2, %v2348_v49 }
 0x5c5   : > { %6710 = vmatpush3.msra.mxu0 %v2884_v28  ;;  %6711 = vmatprep.mubr.msk.f32.mxu0 %vm7118_vm1, %v7117_v6 }
 0x5c6   : > { %6742 = vmatprep.subr.mxu0 %v7117_v6  ;;  %v3377_v57 = vpop.permute.xlu1 %3376 }
 0x5ca   : > { %v3455_v59 = vpop.permute.xlu1 %3454 }
 0x5ce   : > { %v3533_v62 = vpop.permute.xlu1 %3532 }
 0x5d2   : > { %v3611_v1 = vpop.permute.xlu1 %3610 }
 0x5d6   : > { %v3689_v3 = vpop.permute.xlu1 %3688 }
 0x5da   : > { %v3767_v15 = vpop.permute.xlu1 %3766 }
 0x5eb   : > { %v2334_v51 = vpop.xlane.xlu0 %2333 }
 0x5ec   : > { %7027 = vrcp.f32 %v2334_v51 }
 0x5ef   : > { %v3379_v56 = vpop.permute.xlu0 %3378 }
 0x5f3   : > { %v3457_v41 = vpop.permute.xlu0 %3456 }
 0x5f6   : > { %v7028_v54 = vpop.eup %7027 }
 0x5f7   : > { %v2350_v55 = vmul.f32 %v7028_v54, %v7479_v4  ;;  %v3535_v61 = vpop.permute.xlu0 %3534 }
 0x5f9   : > { %6712 = vmatmul.mubr.msk.f32.vlgmr.msra.gmra.mrb[36].mxu0 %vm327_vm2, %v2350_v55 }
 0x5fa   : > { %6743 = vmatpush3.xpose.msk.msra.mxu0 %vm327_vm2, %v3223_v23  ;;  %6744 = vmatprep.mubr.msk.f32.mxu0 %vm7118_vm1, %v7117_v6 }
 0x5fb   : > { %6747 = vmatprep.subr.mxu0 %v7117_v6  ;;  %v3613_v63 = vpop.permute.xlu0 %3612 }
 0x5fd   : > { %6745 = vmatmul.mubr.msk.f32.vlgmr.msra.gmra.mrb[38].mxu0 %vm327_vm2, %v3221_v52 }
 0x5fe   : > { %6748 = vmatpush3.xpose.msk.msra.mxu0 %vm327_vm2, %v3301_v50  ;;  %6749 = vmatprep.mubr.msk.f32.mxu0 %vm7118_vm1, %v7117_v6 }
 0x5ff   : > { %6752 = vmatprep.subr.mxu0 %v7117_v6  ;;  %v3691_v2 = vpop.permute.xlu0 %3690 }
 0x601   : > { %6750 = vmatmul.mubr.msk.f32.vlgmr.msra.gmra.mrb[40].mxu0 %vm327_vm2, %v3299_v53 }
 0x602   : > { %6753 = vmatpush3.xpose.msk.msra.mxu0 %vm327_vm2, %v3379_v56  ;;  %6754 = vmatprep.mubr.msk.f32.mxu0 %vm7118_vm1, %v7117_v6 }
 0x603   : > { %6757 = vmatprep.subr.mxu0 %v7117_v6  ;;  %v3769_v4 = vpop.permute.xlu0 %3768 }
 0x605   : > { %6755 = vmatmul.mubr.msk.f32.vlgmr.msra.gmra.mrb[42].mxu0 %vm327_vm2, %v3377_v57 }
 0x606   : > { %6758 = vmatpush3.xpose.msk.msra.mxu0 %vm327_vm2, %v3457_v41  ;;  %6759 = vmatprep.mubr.msk.f32.mxu0 %vm7118_vm1, %v7117_v6 }
 0x607   : > { %6762 = vmatprep.subr.mxu0 %v7117_v6 }
 0x609   : > { %6760 = vmatmul.mubr.msk.f32.vlgmr.msra.gmra.mrb[44].mxu0 %vm327_vm2, %v3455_v59 }
 0x60a   : > { %6763 = vmatpush3.xpose.msk.msra.mxu0 %vm327_vm2, %v3535_v61  ;;  %6764 = vmatprep.mubr.msk.f32.mxu0 %vm7118_vm1, %v7117_v6 }
 0x60b   : > { %6767 = vmatprep.subr.mxu0 %v7117_v6 }
 0x60d   : > { %6765 = vmatmul.mubr.msk.f32.vlgmr.msra.gmra.mrb[46].mxu0 %vm327_vm2, %v3533_v62 }
 0x60e   : > { %6768 = vmatpush3.xpose.msk.msra.mxu0 %vm327_vm2, %v3613_v63  ;;  %6769 = vmatprep.mubr.msk.f32.mxu0 %vm7118_vm1, %v7117_v6 }
 0x60f   : > { %6772 = vmatprep.subr.mxu0 %v7117_v6 }
 0x611   : > { %6770 = vmatmul.mubr.msk.f32.vlgmr.msra.gmra.mrb[48].mxu0 %vm327_vm2, %v3611_v1 }
 0x612   : > { %6773 = vmatpush3.xpose.msk.msra.mxu0 %vm327_vm2, %v3691_v2  ;;  %6774 = vmatprep.mubr.msk.f32.mxu0 %vm7118_vm1, %v7117_v6 }
 0x613   : > { %6777 = vmatprep.subr.mxu0 %v7117_v6 }
 0x615   : > { %6775 = vmatmul.mubr.msk.f32.vlgmr.msra.gmra.mrb[50].mxu0 %vm327_vm2, %v3689_v3 }
 0x616   : > { %6778 = vmatpush3.xpose.msk.msra.mxu0 %vm327_vm2, %v3769_v4  ;;  %6779 = vmatprep.mubr.msk.f32.mxu0 %vm7118_vm1, %v7117_v6 }
 0x617   : > { %6787 = vmatprep.subr.mxu0 %v7117_v6 }
 0x619   : > { %6780 = vmatmul.mubr.msk.f32.vlgmr.msra.gmra.mrb[52].mxu0 %vm327_vm2, %v3767_v15 }
 0x61a   : > { %6789 = vmatprep.mubr.msk.f32.mxu0 %vm7118_vm1, %v7117_v6 }
 0x633   : > { %v2271_v16 = vpop.xlane.xlu1 %2270 }
 0x634   : > { %v2289_v18 = vsub.f32 %v7500_v26, %v2271_v16  ;;  %v2265_v20 = vpop.xlane.xlu0 %2264 }
 0x635   : > { %v2287_v22 = vsub.f32 %v7498_v24, %v2265_v20 }
 0x636   : > { %v2299_v25 = vmul.f32 1.442695, %v2289_v18 }
 0x637   : > { %v2295_v27 = vmul.f32 1.442695, %v2287_v22 }
 0x638   : > { %7029 = vpow2.f32 %v2299_v25  ;;  %v2277_v29 = vpop.xlane.xlu0 %2276 }
 0x639   : > { %7031 = vpow2.f32 %v2295_v27  ;;  %v2291_v30 = vsub.f32 %v7506_v31, %v2277_v29 }
 0x63b   : > { %v2303_v32 = vmul.f32 1.442695, %v2291_v30 }
 0x63c   : > { %v2283_v33 = vpop.xlane.xlu0 %2282 }
 0x63d   : > { %7033 = vpow2.f32 %v2303_v32  ;;  %v2293_v34 = vsub.f32 %v7510_v35, %v2283_v33 }
 0x63f   : > { %v2307_v37 = vmul.f32 1.442695, %v2293_v34 }
 0x641   : > { %7035 = vpow2.f32 %v2307_v37 }
 0x642   : > { %v7030_v38 = vpop.eup %7029 }
 0x643   : > { %v7032_v39 = vpop.eup %7031  ;;  %v2317_v26 = vsel %vm327_vm2, %v7030_v38, 0.0 }
 0x644   : > { %2318 = vadd.xlane.f32.xlu0 %v2317_v26  ;;  %v2311_v24 = vsel %vm327_vm2, %v7032_v39, 0.0 }
 0x645   : > { %2312 = vadd.xlane.f32.xlu1 %v2311_v24 }
 0x647   : > { %v7579_v40 = vpop.eup %7033 }
 0x648   : > { %v2323_v31 = vsel %vm327_vm2, %v7579_v40, 0.0 }
 0x649   : > { %2324 = vadd.xlane.f32.xlu1 %v2323_v31 }
 0x64b   : > { %v7583_v42 = vpop.eup %7035 }
 0x64c   : > { %v2329_v35 = vsel %vm327_vm2, %v7583_v42, 0.0 }
 0x64d   : > { %2330 = vadd.xlane.f32.xlu0 %v2329_v35 }
 0x65a   : > { %2351 = vrot.lane.b32.xlu1 %v7187_v8, %s7123_s30 }
 0x65e   : > { %2655 = vrot.lane.b32.xlu1 %v7199_v12, %s7123_s30 }
 0x662   : > { %2807 = vrot.lane.b32.xlu1 %v7197_v11, %s7123_s30 }
 0x663   : > { %2503 = vrot.lane.b32.xlu0 %v7185_v7, %s7123_s30 }
 0x68f   : > { %v7595_v43 = vpop.f32.mrb[30].mxu0 }
 0x690   : > { %v6683_v44 = vpop.f32.mrb[31].mxu0 }
 0x693   : > { %v7597_v45 = vpop.f32.mrb[32].mxu0 }
 0x694   : > { %v6693_v46 = vpop.f32.mrb[33].mxu0 }
 0x697   : > { %v7599_v47 = vpop.f32.mrb[34].mxu0 }
 0x698   : > { %v6703_v48 = vpop.f32.mrb[35].mxu0 }
 0x6cc   : > { %v7601_v49 = vpop.f32.mrb[36].mxu0 }
 0x6cd   : > { %v6713_v28 = vpop.f32.mrb[37].mxu0 }
 0x6ce   : > { %v7665_v28 = vld [vmem:[%s7963_s2] sm:$0xf] }
 0x6d0   : > { %v7603_v23 = vpop.f32.mrb[38].mxu0 }
 0x6d1   : > { %v6746_v50 = vpop.f32.mrb[39].mxu0  ;;  %v3844_v51 = vsel %vm327_vm2, %v7603_v23, -inf  ;;  %v2319_v52 = vpop.xlane.xlu0 %2318 }
 0x6d2   : > { %v2313_v53 = vpop.xlane.xlu1 %2312  ;;  %3845 = vmax.xlane.f32.xlu0 %v3844_v51  ;;  %v1638_v50 = vunpack.c.l.bf16 %v7665_v28 }
 0x6d3   : > { %7037 = vrcp.f32 %v2313_v53 }
 0x6d4   : > { %v7607_v54 = vpop.f32.mrb[40].mxu0  ;;  %7039 = vrcp.f32 %v2319_v52 }
 0x6d5   : > { %v6751_v55 = vpop.f32.mrb[41].mxu0  ;;  %v3847_v56 = vsel %vm327_vm2, %v7607_v54, -inf }
 0x6d6   : > { %v2325_v57 = vpop.xlane.xlu1 %2324  ;;  %3848 = vmax.xlane.f32.xlu1 %v3847_v56 }
 0x6d7   : > { %7041 = vrcp.f32 %v2325_v57 }
 0x6d8   : > { %v7611_v41 = vpop.f32.mrb[42].mxu0 }
 0x6d9   : > { %v6756_v59 = vpop.f32.mrb[43].mxu0  ;;  %v3850_v61 = vsel %vm327_vm2, %v7611_v41, -inf }
 0x6da   : > { %v2352_v62 = vpop.permute.xlu1 %2351  ;;  %v2331_v63 = vpop.xlane.xlu0 %2330  ;;  %3851 = vmax.xlane.f32.xlu0 %v3850_v61 }
 0x6db   : > { %6675 = vmatpush3.msra.mxu1 %v2352_v62  ;;  %7043 = vrcp.f32 %v2331_v63 }
 0x6dc   : > { %v7615_v1 = vpop.f32.mrb[44].mxu0  ;;  %6684 = vmatprep.subr.mxu1 %v7117_v6 }
 0x6dd   : > { %v7038_v2 = vpop.eup %7037  ;;  %v6761_v3 = vpop.f32.mrb[45].mxu0  ;;  %v3853_v4 = vsel %vm327_vm2, %v7615_v1, -inf }
 0x6de   : > { %v2343_v15 = vmul.f32 %v7038_v2, %v7032_v39  ;;  %v2504_v16 = vpop.permute.xlu0 %2503  ;;  %3854 = vmax.xlane.f32.xlu0 %v3853_v4  ;;  %v7040_v18 = vpop.eup %7039 }
 0x6df   : > { %v2345_v27 = vmul.f32 %v7040_v18, %v7030_v38  ;;  %v2656_v29 = vpop.permute.xlu1 %2655 }
 0x6e0   : > { %6677 = vmatmul.mubr.msk.f32.vlgmr.msra.gmra.mrb[26].mxu1 %vm327_vm2, %v2343_v15  ;;  %v7621_v20 = vpop.f32.mrb[46].mxu0 }
 0x6e1   : > { %6685 = vmatpush3.msra.mxu1 %v2504_v16  ;;  %v6766_v22 = vpop.f32.mrb[47].mxu0  ;;  %v3856_v25 = vsel %vm327_vm2, %v7621_v20, -inf  ;;  %6686 = vmatprep.mubr.msk.f32.mxu1 %vm7118_vm1, %v7117_v6  ;;  %v7042_v30 = vpop.eup %7041 }
 0x6e2   : > { %3857 = vmax.xlane.f32.xlu1 %v3856_v25  ;;  %6694 = vmatprep.subr.mxu1 %v7117_v6  ;;  %v2347_v37 = vmul.f32 %v7042_v30, %v7579_v40 }
 0x6e3   : > { %v2808_v39 = vpop.permute.xlu1 %2807 }
 0x6e4   : > { %6687 = vmatmul.mubr.msk.f32.vlgmr.msra.gmra.mrb[28].mxu1 %vm327_vm2, %v2345_v27  ;;  %v7629_v32 = vpop.f32.mrb[48].mxu0 }
 0x6e5   : > { %6695 = vmatpush3.msra.mxu1 %v2656_v29  ;;  %v6771_v33 = vpop.f32.mrb[49].mxu0  ;;  %v3859_v34 = vsel %vm327_vm2, %v7629_v32, -inf  ;;  %6696 = vmatprep.mubr.msk.f32.mxu1 %vm7118_vm1, %v7117_v6  ;;  %v7044_v38 = vpop.eup %7043 }
 0x6e6   : > { %3860 = vmax.xlane.f32.xlu0 %v3859_v34  ;;  %6704 = vmatprep.subr.mxu1 %v7117_v6  ;;  %v2349_v35 = vmul.f32 %v7044_v38, %v7583_v42  ;;  %v7659_v42 = vld [vmem:[%s7963_s2 + $0x4] sm:$0xff]  }
 0x6e7   : > { %v2961_v48 = vunpack.c.l.bf16 %v7659_v42 }
 0x6e8   : > { %6697 = vmatmul.mubr.msk.f32.vlgmr.msra.gmra.mrb[30].mxu1 %vm327_vm2, %v2347_v37  ;;  %v3762_v26 = vpop.f32.mrb[50].mxu0 }
 0x6e9   : > { %6705 = vmatpush3.msra.mxu1 %v2808_v39  ;;  %v6776_v24 = vpop.f32.mrb[51].mxu0  ;;  %v3862_v31 = vsel %vm327_vm2, %v3762_v26, -inf  ;;  %6706 = vmatprep.mubr.msk.f32.mxu1 %vm7118_vm1, %v7117_v6 }
 0x6ea   : > { %3863 = vmax.xlane.f32.xlu1 %v3862_v31  ;;  %6714 = vmatprep.subr.mxu1 %v2961_v48 }
 0x6ec   : > { %6707 = vmatmul.mubr.msk.f32.vlgmr.msra.gmra.mrb[32].mxu1 %vm327_vm2, %v2349_v35  ;;  %v3840_v40 = vpop.f32.mrb[52].mxu0 }
 0x6ed   : > { %v6781_v44 = vpop.f32.mrb[53].mxu0  ;;  %v3865_v46 = vsel %vm327_vm2, %v3840_v40, -inf  ;;  %6715 = vmatpush3.msra.mxu1 %v2961_v48 }
 0x6ee   : > { %3866 = vmax.xlane.f32.xlu0 %v3865_v46  ;;  %6728 = vmatprep.subr.mxu1 %v1638_v50 }
 0x6fb   : > { %3932 = vrot.lane.b32.xlu1 %v7187_v8, %s7126_s7 }
 0x6ff   : > { %4084 = vrot.lane.b32.xlu1 %v7185_v7, %s7126_s7 }
 0x703   : > { %4160 = vrot.lane.b32.xlu1 %v7190_v9, %s7126_s7 }
 0x704   : > { %4008 = vrot.lane.b32.xlu0 %v7192_v10, %s7126_s7 }
 0x707   : > { %4312 = vrot.lane.b32.xlu1 %v7203_v14, %s7126_s7 }
 0x708   : > { %4236 = vrot.lane.b32.xlu0 %v7199_v12, %s7126_s7 }
 0x75f   : > { %v3846_v51 = vpop.xlane.xlu0 %3845 }
 0x760   : > { %v3868_v52 = vsub.f32 %v7603_v23, %v3846_v51 }
 0x762   : > { %v3876_v53 = vmul.f32 1.442695, %v3868_v52 }
 0x763   : > { %v3849_v55 = vpop.xlane.xlu1 %3848 }
 0x764   : > { %7045 = vpow2.f32 %v3876_v53  ;;  %v3869_v56 = vsub.f32 %v7607_v54, %v3849_v55 }
 0x766   : > { %v3878_v57 = vmul.f32 1.442695, %v3869_v56 }
 0x767   : > { %v3852_v59 = vpop.xlane.xlu0 %3851 }
 0x768   : > { %7047 = vpow2.f32 %v3878_v57  ;;  %v3870_v61 = vsub.f32 %v7611_v41, %v3852_v59 }
 0x76a   : > { %v3880_v62 = vmul.f32 1.442695, %v3870_v61 }
 0x76b   : > { %v3855_v63 = vpop.xlane.xlu0 %3854 }
 0x76c   : > { %7049 = vpow2.f32 %v3880_v62  ;;  %v3871_v2 = vsub.f32 %v7615_v1, %v3855_v63 }
 0x76e   : > { %v7674_v3 = vpop.eup %7045  ;;  %v3882_v4 = vmul.f32 1.442695, %v3871_v2 }
 0x76f   : > { %v3858_v15 = vpop.xlane.xlu1 %3857  ;;  %v3892_v23 = vsel %vm327_vm2, %v7674_v3, 0.0 }
 0x770   : > { %7051 = vpow2.f32 %v3882_v4  ;;  %v3872_v54 = vsub.f32 %v7621_v20, %v3858_v15  ;;  %3893 = vadd.xlane.f32.xlu1 %v3892_v23 }
 0x772   : > { %v7679_v16 = vpop.eup %7047  ;;  %v3884_v18 = vmul.f32 1.442695, %v3872_v54 }
 0x773   : > { %v3861_v41 = vpop.xlane.xlu0 %3860  ;;  %v3895_v22 = vsel %vm327_vm2, %v7679_v16, 0.0 }
 0x774   : > { %7053 = vpow2.f32 %v3884_v18  ;;  %v3873_v1 = vsub.f32 %v7629_v32, %v3861_v41  ;;  %3896 = vadd.xlane.f32.xlu0 %v3895_v22  ;;  %v4542_v22 = vunpack.c.h.bf16 %v7659_v42 }
 0x776   : > { %v7684_v25 = vpop.eup %7049  ;;  %v3886_v27 = vmul.f32 1.442695, %v3873_v1 }
 0x777   : > { %v3864_v29 = vpop.xlane.xlu1 %3863  ;;  %v3898_v30 = vsel %vm327_vm2, %v7684_v25, 0.0 }
 0x778   : > { %7055 = vpow2.f32 %v3886_v27  ;;  %v3874_v20 = vsub.f32 %v3762_v26, %v3864_v29  ;;  %3899 = vadd.xlane.f32.xlu1 %v3898_v30 }
 0x77a   : > { %v7688_v33 = vpop.eup %7051  ;;  %v3888_v34 = vmul.f32 1.442695, %v3874_v20 }
 0x77b   : > { %v3867_v37 = vpop.xlane.xlu0 %3866  ;;  %v3901_v38 = vsel %vm327_vm2, %v7688_v33, 0.0 }
 0x77c   : > { %7057 = vpow2.f32 %v3888_v34  ;;  %v3875_v32 = vsub.f32 %v3840_v40, %v3867_v37  ;;  %3902 = vadd.xlane.f32.xlu0 %v3901_v38 }
 0x77e   : > { %v7692_v39 = vpop.eup %7053  ;;  %v3890_v24 = vmul.f32 1.442695, %v3875_v32 }
 0x77f   : > { %v4009_v31 = vpop.permute.xlu0 %4008  ;;  %v3904_v35 = vsel %vm327_vm2, %v7692_v39, 0.0 }
 0x780   : > { %7059 = vpow2.f32 %v3890_v24  ;;  %3905 = vadd.xlane.f32.xlu1 %v3904_v35  ;;  %6788 = vmatpush3.msra.mxu0 %v4009_v31 }
 0x781   : > { %6797 = vmatprep.subr.mxu0 %v7117_v6 }
 0x782   : > { %v7697_v26 = vpop.eup %7055 }
 0x783   : > { %v3907_v44 = vsel %vm327_vm2, %v7697_v26, 0.0 }
 0x784   : > { %3908 = vadd.xlane.f32.xlu0 %v3907_v44 }
 0x786   : > { %v7701_v40 = vpop.eup %7057 }
 0x787   : > { %v3910_v46 = vsel %vm327_vm2, %v7701_v40, 0.0 }
 0x788   : > { %3911 = vadd.xlane.f32.xlu1 %v3910_v46 }
 0x78a   : > { %v7705_v48 = vpop.eup %7059 }
 0x78b   : > { %v3913_v51 = vsel %vm327_vm2, %v7705_v48, 0.0 }
 0x78c   : > { %3914 = vadd.xlane.f32.xlu0 %v3913_v51 }
 0x799   : > { %4464 = vrot.lane.b32.xlu1 %v7201_v13, %s7126_s7 }
 0x79d   : > { %4680 = vrot.lane.b32.xlu1 %v7187_v8, %s7127_s12 }
 0x7a1   : > { %4758 = vrot.lane.b32.xlu1 %v7192_v10, %s7127_s12 }
 0x7a2   : > { %4388 = vrot.lane.b32.xlu0 %v7197_v11, %s7126_s7 }
 0x7a5   : > { %4836 = vrot.lane.b32.xlu1 %v7185_v7, %s7127_s12 }
 0x7a6   : > { %4682 = vrot.lane.b32.xlu0 %v7187_v8, %s7128_s13 }
 0x7a9   : > { %4914 = vrot.lane.b32.xlu1 %v7190_v9, %s7127_s12 }
 0x7aa   : > { %4760 = vrot.lane.b32.xlu0 %v7192_v10, %s7128_s13 }
 0x7ad   : > { %5072 = vrot.lane.b32.xlu1 %v7203_v14, %s7128_s13 }
 0x7ae   : > { %4838 = vrot.lane.b32.xlu0 %v7185_v7, %s7128_s13 }
 0x7b1   : > { %5070 = vrot.lane.b32.xlu1 %v7203_v14, %s7127_s12 }
 0x7b2   : > { %4916 = vrot.lane.b32.xlu0 %v7190_v9, %s7128_s13 }
 0x7b3   : > { %v2423_v52 = vpop.f32.mrb[26].mxu1 }
 0x7b4   : > { %v6678_v53 = vpop.f32.mrb[27].mxu1  ;;  %6716 = vmatprep.mubr.msk.f32.mxu1 %vm327_vm2, %v2423_v52 }
 0x7b5   : > { %6717 = vmatmul.mubr.msk.f32.vlgmr.msra.gmra.mrb[34].mxu1 %vm327_vm2, %v7595_v43  ;;  %5228 = vrot.lane.b32.xlu1 %v7201_v13, %s7128_s13 }
 0x7b6   : > { %4994 = vrot.lane.b32.xlu0 %v7199_v12, %s7128_s13  ;;  %6729 = vmatpush3.msra.mxu1 %v1638_v50 }
 0x7b7   : > { %v2575_v55 = vpop.f32.mrb[28].mxu1  ;;  %6782 = vmatprep.subr.mxu1 %v7117_v6 }
 0x7b8   : > { %v6688_v56 = vpop.f32.mrb[29].mxu1  ;;  %6719 = vmatprep.mubr.msk.f32.mxu1 %vm327_vm2, %v2575_v55 }
 0x7b9   : > { %6720 = vmatmul.mubr.msk.f32.gmra.mrb[36].mxu1 %vm327_vm2, %v7597_v45  ;;  %5226 = vrot.lane.b32.xlu1 %v7201_v13, %s7127_s12  ;;  %v3933_v45 = vpop.permute.xlu1 %3932 }
 0x7ba   : > { %4992 = vrot.lane.b32.xlu0 %v7199_v12, %s7127_s12 }
 0x7bb   : > { %v2727_v43 = vpop.f32.mrb[30].mxu1 }
 0x7bc   : > { %v6698_v57 = vpop.f32.mrb[31].mxu1  ;;  %6722 = vmatprep.mubr.msk.f32.mxu1 %vm327_vm2, %v2727_v43 }
 0x7bd   : > { %6723 = vmatmul.mubr.msk.f32.gmra.mrb[38].mxu1 %vm327_vm2, %v7599_v47  ;;  %v4237_v47 = vpop.permute.xlu0 %4236 }
 0x7be   : > { %5150 = vrot.lane.b32.xlu0 %v7197_v11, %s7128_s13 }
 0x7bf   : > { %v2879_v28 = vpop.f32.mrb[32].mxu1 }
 0x7c0   : > { %v6708_v50 = vpop.f32.mrb[33].mxu1  ;;  %6725 = vmatprep.mubr.msk.f32.mxu1 %vm327_vm2, %v2879_v28 }
 0x7c1   : > { %6726 = vmatmul.mubr.msk.f32.gmra.mrb[40].mxu1 %vm327_vm2, %v7601_v49 }
 0x7c2   : > { %6730 = vmatprep.mubr.msk.f32.mxu1 %vm327_vm2, %v7482_v5  ;;  %5148 = vrot.lane.b32.xlu0 %v7197_v11, %s7127_s12 }
 0x7c5   : > { %6731 = vmatmul.mubr.msk.f32.vlgmr.msra.gmra.mrb[34].mxu1 %vm327_vm2, %v7376_v36  ;;  %v4085_v36 = vpop.permute.xlu1 %4084 }
 0x7c6   : > { %6783 = vmatpush3.msra.mxu1 %v3933_v45  ;;  %6733 = vmatprep.mubr.msk.f32.mxu1 %vm327_vm2, %v7486_v17 }
 0x7c7   : > { %6792 = vmatprep.subr.mxu1 %v7117_v6 }
 0x7c9   : > { %6734 = vmatmul.mubr.msk.f32.gmra.mrb[36].mxu1 %vm327_vm2, %v7384_v58  ;;  %v4161_v5 = vpop.permute.xlu1 %4160 }
 0x7ca   : > { %6736 = vmatprep.mubr.msk.f32.mxu1 %vm327_vm2, %v7494_v19 }
 0x7cd   : > { %6737 = vmatmul.mubr.msk.f32.gmra.mrb[38].mxu1 %vm327_vm2, %v7386_v60  ;;  %v4313_v17 = vpop.permute.xlu1 %4312 }
 0x7ce   : > { %6739 = vmatprep.mubr.msk.f32.mxu1 %vm327_vm2, %v7496_v21 }
 0x7d1   : > { %6740 = vmatmul.mubr.msk.f32.gmra.mrb[40].mxu1 %vm327_vm2, %v7388_v0 }
 0x7d2   : > { %6784 = vmatprep.mubr.msk.f32.mxu1 %vm7118_vm1, %v7117_v6 }
 0x7fd   : > { %v3894_v58 = vpop.xlane.xlu1 %3893 }
 0x7fe   : > { %7061 = vrcp.f32 %v3894_v58 }
 0x801   : > { %v3897_v49 = vpop.xlane.xlu0 %3896 }
 0x802   : > { %7063 = vrcp.f32 %v3897_v49 }
 0x805   : > { %v3900_v19 = vpop.xlane.xlu1 %3899 }
 0x806   : > { %7065 = vrcp.f32 %v3900_v19 }
 0x808   : > { %v7062_v60 = vpop.eup %7061 }
 0x809   : > { %v3924_v59 = vmul.f32 %v7062_v60, %v7674_v3  ;;  %v3903_v21 = vpop.xlane.xlu0 %3902 }
 0x80a   : > { %7067 = vrcp.f32 %v3903_v21 }
 0x80b   : > { %6785 = vmatmul.mubr.msk.f32.vlgmr.msra.gmra.mrb[42].mxu1 %vm327_vm2, %v3924_v59 }
 0x80c   : > { %v7064_v0 = vpop.eup %7063  ;;  %6793 = vmatpush3.msra.mxu1 %v4085_v36  ;;  %6794 = vmatprep.mubr.msk.f32.mxu1 %vm7118_vm1, %v7117_v6 }
 0x80d   : > { %v3925_v61 = vmul.f32 %v7064_v0, %v7679_v16  ;;  %v3906_v62 = vpop.xlane.xlu1 %3905  ;;  %6802 = vmatprep.subr.mxu1 %v7117_v6 }
 0x80e   : > { %7069 = vrcp.f32 %v3906_v62 }
 0x80f   : > { %6790 = vmatmul.mubr.msk.f32.vlgmr.msra.gmra.mrb[54].mxu0 %vm327_vm2, %v3925_v61 }
 0x810   : > { %v7066_v63 = vpop.eup %7065  ;;  %6798 = vmatpush3.msra.mxu0 %v4161_v5  ;;  %6799 = vmatprep.mubr.msk.f32.mxu0 %vm7118_vm1, %v7117_v6 }
 0x811   : > { %v3926_v2 = vmul.f32 %v7066_v63, %v7684_v25  ;;  %v3909_v3 = vpop.xlane.xlu0 %3908  ;;  %6807 = vmatprep.subr.mxu0 %v7117_v6 }
 0x812   : > { %7071 = vrcp.f32 %v3909_v3 }
 0x813   : > { %6795 = vmatmul.mubr.msk.f32.vlgmr.msra.gmra.mrb[44].mxu1 %vm327_vm2, %v3926_v2 }
 0x814   : > { %v7068_v4 = vpop.eup %7067  ;;  %6803 = vmatpush3.msra.mxu1 %v4237_v47  ;;  %6804 = vmatprep.mubr.msk.f32.mxu1 %vm7118_vm1, %v7117_v6 }
 0x815   : > { %v3927_v15 = vmul.f32 %v7068_v4, %v7688_v33  ;;  %v3912_v23 = vpop.xlane.xlu1 %3911  ;;  %6812 = vmatprep.subr.mxu1 %v7117_v6 }
 0x816   : > { %7073 = vrcp.f32 %v3912_v23 }
 0x817   : > { %6800 = vmatmul.mubr.msk.f32.vlgmr.msra.gmra.mrb[56].mxu0 %vm327_vm2, %v3927_v15 }
 0x818   : > { %v7070_v54 = vpop.eup %7069  ;;  %6808 = vmatpush3.msra.mxu0 %v4313_v17  ;;  %6809 = vmatprep.mubr.msk.f32.mxu0 %vm7118_vm1, %v7117_v6 }
 0x819   : > { %v3928_v16 = vmul.f32 %v7070_v54, %v7692_v39  ;;  %v4465_v18 = vpop.permute.xlu1 %4464  ;;  %v3915_v41 = vpop.xlane.xlu0 %3914  ;;  %6817 = vmatprep.subr.mxu0 %v7117_v6 }
 0x81a   : > { %7075 = vrcp.f32 %v3915_v41 }
 0x81b   : > { %6805 = vmatmul.mubr.msk.f32.vlgmr.msra.gmra.mrb[46].mxu1 %vm327_vm2, %v3928_v16 }
 0x81c   : > { %v7072_v1 = vpop.eup %7071  ;;  %6814 = vmatprep.mubr.msk.f32.mxu1 %vm7118_vm1, %v7117_v6 }
 0x81d   : > { %v3929_v25 = vmul.f32 %v7072_v1, %v7697_v26  ;;  %v4681_v27 = vpop.permute.xlu1 %4680  ;;  %v4389_v29 = vpop.permute.xlu0 %4388 }
 0x81e   : > { %6813 = vmatpush3.msra.mxu1 %v4389_v29 }
 0x81f   : > { %6810 = vmatmul.mubr.msk.f32.vlgmr.msra.gmra.mrb[58].mxu0 %vm327_vm2, %v3929_v25  ;;  %6822 = vmatprep.subr.mxu1 %v4542_v22 }
 0x820   : > { %v7074_v30 = vpop.eup %7073  ;;  %6818 = vmatpush3.msra.mxu0 %v4465_v18  ;;  %6819 = vmatprep.mubr.msk.f32.mxu0 %vm7118_vm1, %v7117_v6 }
 0x821   : > { %v3930_v20 = vmul.f32 %v7074_v30, %v7701_v40  ;;  %v4759_v42 = vpop.permute.xlu1 %4758  ;;  %v4683_v33 = vpop.permute.xlu0 %4682  ;;  %6836 = vmatprep.subr.mxu0 %v7117_v6 }
 0x823   : > { %6815 = vmatmul.mubr.msk.f32.vlgmr.msra.gmra.mrb[48].mxu1 %vm327_vm2, %v3930_v20 }
 0x824   : > { %v7076_v34 = vpop.eup %7075  ;;  %6823 = vmatpush3.msra.mxu1 %v4542_v22 }
 0x825   : > { %v3931_v37 = vmul.f32 %v7076_v34, %v7705_v48  ;;  %v4837_v38 = vpop.permute.xlu1 %4836  ;;  %6856 = vmatprep.subr.mxu1 %v7117_v6  ;;  %v4761_v32 = vpop.permute.xlu0 %4760 }
 0x827   : > { %6820 = vmatmul.mubr.msk.f32.vlgmr.msra.gmra.mrb[60].mxu0 %vm327_vm2, %v3931_v37 }
 0x828   : > { %6837 = vmatpush3.xpose.msk.msra.mxu0 %vm327_vm2, %v4683_v33  ;;  %6838 = vmatprep.mubr.msk.f32.mxu0 %vm7118_vm1, %v7117_v6 }
 0x829   : > { %v4915_v39 = vpop.permute.xlu1 %4914  ;;  %6841 = vmatprep.subr.mxu0 %v7117_v6  ;;  %v4839_v24 = vpop.permute.xlu0 %4838 }
 0x82b   : > { %6839 = vmatmul.mubr.msk.f32.vlgmr.msra.gmra.mrb[62].mxu0 %vm327_vm2, %v4681_v27 }
 0x82c   : > { %6842 = vmatpush3.xpose.msk.msra.mxu0 %vm327_vm2, %v4761_v32  ;;  %6843 = vmatprep.mubr.msk.f32.mxu0 %vm7118_vm1, %v7117_v6 }
 0x82d   : > { %v5073_v31 = vpop.permute.xlu1 %5072  ;;  %6846 = vmatprep.subr.mxu0 %v7117_v6  ;;  %v4917_v26 = vpop.permute.xlu0 %4916 }
 0x82f   : > { %6844 = vmatmul.mubr.msk.f32.vlgmr.msra.gmra.mrb[64].mxu0 %vm327_vm2, %v4759_v42 }
 0x830   : > { %6847 = vmatpush3.xpose.msk.msra.mxu0 %vm327_vm2, %v4839_v24  ;;  %6848 = vmatprep.mubr.msk.f32.mxu0 %vm7118_vm1, %v7117_v6 }
 0x831   : > { %6851 = vmatprep.subr.mxu0 %v7117_v6  ;;  %v5071_v35 = vpop.permute.xlu1 %5070  ;;  %v4995_v52 = vpop.permute.xlu0 %4994 }
 0x833   : > { %6849 = vmatmul.mubr.msk.f32.vlgmr.msra.gmra.mrb[66].mxu0 %vm327_vm2, %v4837_v38 }
 0x834   : > { %6852 = vmatpush3.xpose.msk.msra.mxu0 %vm327_vm2, %v4917_v26  ;;  %6853 = vmatprep.mubr.msk.f32.mxu0 %vm7118_vm1, %v7117_v6 }
 0x835   : > { %6861 = vmatprep.subr.mxu0 %v7117_v6  ;;  %v5229_v44 = vpop.permute.xlu1 %5228  ;;  %v4993_v5 = vpop.permute.xlu0 %4992 }
 0x837   : > { %6854 = vmatmul.mubr.msk.f32.vlgmr.msra.gmra.mrb[68].mxu0 %vm327_vm2, %v4915_v39 }
 0x838   : > { %6862 = vmatpush3.xpose.msk.msra.mxu0 %vm327_vm2, %v5073_v31  ;;  %6863 = vmatprep.mubr.msk.f32.mxu0 %vm7118_vm1, %v7117_v6 }
 0x839   : > { %6871 = vmatprep.subr.mxu0 %v7117_v6  ;;  %v5227_v40 = vpop.permute.xlu1 %5226  ;;  %v5151_v19 = vpop.permute.xlu0 %5150 }
 0x83b   : > { %6864 = vmatmul.mubr.msk.f32.vlgmr.msra.gmra.mrb[70].mxu0 %vm327_vm2, %v5071_v35 }
 0x83c   : > { %6872 = vmatpush3.xpose.msk.msra.mxu0 %vm327_vm2, %v5229_v44  ;;  %6873 = vmatprep.mubr.msk.f32.mxu0 %vm7118_vm1, %v7117_v6 }
 0x83d   : > { %6881 = vmatprep.subr.mxu0 %v7117_v6  ;;  %v5149_v0 = vpop.permute.xlu0 %5148 }
 0x83f   : > { %6874 = vmatmul.mubr.msk.f32.vlgmr.msra.gmra.mrb[72].mxu0 %vm327_vm2, %v5227_v40 }
 0x840   : > { %6883 = vmatprep.mubr.msk.f32.mxu0 %vm7118_vm1, %v7117_v6 }
 0x8de   : > { %v4004_v46 = vpop.f32.mrb[42].mxu1 }
 0x8df   : > { %v6786_v48 = vpop.f32.mrb[43].mxu1  ;;  %6824 = vmatprep.mubr.msk.f32.mxu1 %vm327_vm2, %v4004_v46 }
 0x8e2   : > { %v4080_v51 = vpop.f32.mrb[54].mxu0 }
 0x8e3   : > { %v6791_v53 = vpop.f32.mrb[55].mxu0  ;;  %6825 = vmatmul.mubr.msk.f32.vlgmr.msra.gmra.mrb[34].mxu1 %vm327_vm2, %v4080_v51 }
 0x8e4   : > { %6857 = vmatpush3.xpose.msk.msra.mxu1 %vm327_vm2, %v4995_v52 }
 0x8e5   : > { %6866 = vmatprep.subr.mxu1 %v7117_v6 }
 0x8e6   : > { %v4156_v55 = vpop.f32.mrb[44].mxu1 }
 0x8e7   : > { %v6796_v56 = vpop.f32.mrb[45].mxu1  ;;  %6827 = vmatprep.mubr.msk.f32.mxu1 %vm327_vm2, %v4156_v55 }
 0x8ea   : > { %v4232_v43 = vpop.f32.mrb[56].mxu0 }
 0x8eb   : > { %v6801_v57 = vpop.f32.mrb[57].mxu0  ;;  %6828 = vmatmul.mubr.msk.f32.gmra.mrb[36].mxu1 %vm327_vm2, %v4232_v43 }
 0x8ee   : > { %v4308_v28 = vpop.f32.mrb[46].mxu1 }
 0x8ef   : > { %v6806_v50 = vpop.f32.mrb[47].mxu1  ;;  %6830 = vmatprep.mubr.msk.f32.mxu1 %vm327_vm2, %v4308_v28 }
 0x8f2   : > { %v4384_v45 = vpop.f32.mrb[58].mxu0 }
 0x8f3   : > { %v6811_v36 = vpop.f32.mrb[59].mxu0  ;;  %6831 = vmatmul.mubr.msk.f32.gmra.mrb[38].mxu1 %vm327_vm2, %v4384_v45 }
 0x8f6   : > { %v4460_v17 = vpop.f32.mrb[48].mxu1 }
 0x8f7   : > { %v6816_v47 = vpop.f32.mrb[49].mxu1  ;;  %6833 = vmatprep.mubr.msk.f32.mxu1 %vm327_vm2, %v4460_v17 }
 0x8fa   : > { %v4536_v58 = vpop.f32.mrb[60].mxu0 }
 0x8fb   : > { %v6821_v49 = vpop.f32.mrb[61].mxu0  ;;  %6834 = vmatmul.mubr.msk.f32.gmra.mrb[40].mxu1 %vm327_vm2, %v4536_v58 }
 0x8fc   : > { %6858 = vmatprep.mubr.msk.f32.mxu1 %vm7118_vm1, %v7117_v6 }
 0x8fe   : > { %v7850_v60 = vpop.f32.mrb[62].mxu0 }
 0x8ff   : > { %v6840_v59 = vpop.f32.mrb[63].mxu0  ;;  %6859 = vmatmul.mubr.msk.f32.vlgmr.msra.gmra.mrb[50].mxu1 %vm327_vm2, %v4993_v5  ;;  %v5304_v21 = vsel %vm327_vm2, %v7850_v60, -inf }
 0x900   : > { %6867 = vmatpush3.xpose.msk.msra.mxu1 %vm327_vm2, %v5151_v19  ;;  %5305 = vmax.xlane.f32.xlu0 %v5304_v21 }
 0x901   : > { %6868 = vmatprep.mubr.msk.f32.mxu1 %vm7118_vm1, %v7117_v6  ;;  %6876 = vmatprep.subr.mxu1 %v7117_v6 }
 0x902   : > { %v4832_v61 = vpop.f32.mrb[64].mxu0 }
 0x903   : > { %v6845_v62 = vpop.f32.mrb[65].mxu0  ;;  %6869 = vmatmul.mubr.msk.f32.vlgmr.msra.gmra.mrb[52].mxu1 %vm327_vm2, %v5149_v0  ;;  %v5307_v63 = vsel %vm327_vm2, %v4832_v61, -inf }
 0x904   : > { %5308 = vmax.xlane.f32.xlu1 %v5307_v63  ;;  %6878 = vmatprep.mubr.msk.f32.mxu1 %vm7118_vm1, %v7117_v6 }
 0x906   : > { %v4910_v2 = vpop.f32.mrb[66].mxu0 }
 0x907   : > { %v6850_v3 = vpop.f32.mrb[67].mxu0  ;;  %v5310_v4 = vsel %vm327_vm2, %v4910_v2, -inf }
 0x908   : > { %5311 = vmax.xlane.f32.xlu0 %v5310_v4 }
 0x90a   : > { %v4988_v15 = vpop.f32.mrb[68].mxu0 }
 0x90b   : > { %v6855_v23 = vpop.f32.mrb[69].mxu0  ;;  %v5313_v54 = vsel %vm327_vm2, %v4988_v15, -inf }
 0x90c   : > { %5314 = vmax.xlane.f32.xlu0 %v5313_v54 }
 0x90e   : > { %v5144_v16 = vpop.f32.mrb[70].mxu0 }
 0x90f   : > { %v6865_v18 = vpop.f32.mrb[71].mxu0  ;;  %v5319_v41 = vsel %vm327_vm2, %v5144_v16, -inf }
 0x910   : > { %5320 = vmax.xlane.f32.xlu0 %v5319_v41 }
 0x912   : > { %v5300_v22 = vpop.f32.mrb[72].mxu0 }
 0x913   : > { %v6875_v1 = vpop.f32.mrb[73].mxu0  ;;  %v5325_v25 = vsel %vm327_vm2, %v5300_v22, -inf }
 0x914   : > { %5326 = vmax.xlane.f32.xlu0 %v5325_v25 }
 0x98d   : > { %v5306_v27 = vpop.xlane.xlu0 %5305 }
 0x98e   : > { %v5328_v55 = vsub.f32 %v7850_v60, %v5306_v27 }
 0x990   : > { %v5336_v56 = vmul.f32 1.442695, %v5328_v55 }
 0x991   : > { %v5309_v29 = vpop.xlane.xlu1 %5308 }
 0x992   : > { %v5329_v30 = vsub.f32 %v4832_v61, %v5309_v29 }
 0x994   : > { %v5338_v20 = vmul.f32 1.442695, %v5329_v30 }
 0x995   : > { %v5312_v42 = vpop.xlane.xlu0 %5311 }
 0x996   : > { %7077 = vpow2.f32 %v5338_v20  ;;  %v5330_v43 = vsub.f32 %v4910_v2, %v5312_v42 }
 0x998   : > { %v5340_v57 = vmul.f32 1.442695, %v5330_v43 }
 0x999   : > { %v5315_v33 = vpop.xlane.xlu0 %5314 }
 0x99a   : > { %v5331_v34 = vsub.f32 %v4988_v15, %v5315_v33 }
 0x99c   : > { %v5342_v37 = vmul.f32 1.442695, %v5331_v34 }
 0x99d   : > { %v5321_v38 = vpop.xlane.xlu0 %5320 }
 0x99e   : > { %7079 = vpow2.f32 %v5342_v37  ;;  %v5333_v32 = vsub.f32 %v5144_v16, %v5321_v38 }
 0x9a0   : > { %v7078_v39 = vpop.eup %7077  ;;  %v5346_v24 = vmul.f32 1.442695, %v5333_v32 }
 0x9a1   : > { %v5327_v31 = vpop.xlane.xlu0 %5326  ;;  %v5355_v35 = vsel %vm327_vm2, %v7078_v39, 0.0 }
 0x9a2   : > { %7081 = vpow2.f32 %v5346_v24  ;;  %v5335_v26 = vsub.f32 %v5300_v22, %v5327_v31  ;;  %5356 = vadd.xlane.f32.xlu0 %v5355_v35  ;;  %v6360_v24 = vld [vmem:[%s7963_s2 + $0xc] sm:$0xf] }
 0x9a4   : > { %v5350_v44 = vmul.f32 1.442695, %v5335_v26  ;;  %v6002_v26 = vunpack.c.l.bf16 %v6360_v24 }
 0x9a6   : > { %7083 = vpow2.f32 %v5350_v44 }
 0x9a7   : > { %7085 = vpow2.f32 %v5336_v56 }
 0x9a8   : > { %v7868_v40 = vpop.eup %7079  ;;  %7087 = vpow2.f32 %v5340_v57 }
 0x9a9   : > { %v5361_v46 = vsel %vm327_vm2, %v7868_v40, 0.0 }
 0x9aa   : > { %5362 = vadd.xlane.f32.xlu0 %v5361_v46 }
 0x9ac   : > { %v7872_v48 = vpop.eup %7081 }
 0x9ad   : > { %v5367_v51 = vsel %vm327_vm2, %v7872_v48, 0.0 }
 0x9ae   : > { %5368 = vadd.xlane.f32.xlu0 %v5367_v51 }
 0x9b0   : > { %v7876_v52 = vpop.eup %7083 }
 0x9b1   : > { %v5373_v53 = vsel %vm327_vm2, %v7876_v52, 0.0  ;;  %v7086_v17 = vpop.eup %7085 }
 0x9b2   : > { %5374 = vadd.xlane.f32.xlu0 %v5373_v53  ;;  %v5352_v47 = vsel %vm327_vm2, %v7086_v17, 0.0 }
 0x9c8   : > { %5468 = vrot.lane.b32.xlu0 %v7192_v10, %s7129_s14 }
 0x9cc   : > { %5696 = vrot.lane.b32.xlu0 %v7199_v12, %s7129_s14  ;;  %v7088_v12 = vpop.eup %7087 }
 0x9cd   : > { %v5358_v58 = vsel %vm327_vm2, %v7088_v12, 0.0 }
 0x9d0   : > { %5848 = vrot.lane.b32.xlu0 %v7197_v11, %s7129_s14 }
 0x9d2   : > { %v5066_v28 = vpop.f32.mrb[50].mxu1 }
 0x9d3   : > { %v6860_v50 = vpop.f32.mrb[51].mxu1  ;;  %v5316_v45 = vsel %vm327_vm2, %v5066_v28, -inf }
 0x9d4   : > { %5317 = vmax.xlane.f32.xlu1 %v5316_v45 }
 0x9d6   : > { %v5222_v36 = vpop.f32.mrb[52].mxu1 }
 0x9d7   : > { %v6870_v5 = vpop.f32.mrb[53].mxu1  ;;  %v5322_v10 = vsel %vm327_vm2, %v5222_v36, -inf }
 0x9d8   : > { %5323 = vmax.xlane.f32.xlu1 %v5322_v10 }
 0x9dc   : > { %5353 = vadd.xlane.f32.xlu1 %v5352_v47 }
 0x9e0   : > { %5359 = vadd.xlane.f32.xlu1 %v5358_v58 }
 0x9f1   : > { %5392 = vrot.lane.b32.xlu1 %v7187_v8, %s7129_s14 }
 0x9f5   : > { %5544 = vrot.lane.b32.xlu1 %v7185_v7, %s7129_s14 }
 0x9f9   : > { %5620 = vrot.lane.b32.xlu1 %v7190_v9, %s7129_s14 }
 0x9fd   : > { %5772 = vrot.lane.b32.xlu1 %v7203_v14, %s7129_s14 }
 0xa2f   : > { %v5357_v11 = vpop.xlane.xlu0 %5356 }
 0xa30   : > { %7089 = vrcp.f32 %v5357_v11 }
 0xa37   : > { %v5363_v49 = vpop.xlane.xlu0 %5362 }
 0xa3a   : > { %v7090_v59 = vpop.eup %7089 }
 0xa3b   : > { %v5369_v19 = vpop.xlane.xlu0 %5368  ;;  %v5385_v21 = vmul.f32 %v7090_v59, %v7078_v39 }
 0xa3f   : > { %v5375_v60 = vpop.xlane.xlu0 %5374 }
 0xa43   : > { %v5469_v0 = vpop.permute.xlu0 %5468 }
 0xa44   : > { %6882 = vmatpush3.msra.mxu0 %v5469_v0 }
 0xa45   : > { %6884 = vmatmul.mubr.msk.f32.vlgmr.msra.gmra.mrb[74].mxu0 %vm327_vm2, %v5385_v21  ;;  %6891 = vmatprep.subr.mxu0 %v7117_v6 }
 0xa46   : > { %6893 = vmatprep.mubr.msk.f32.mxu0 %vm7118_vm1, %v7117_v6 }
 0xa47   : > { %v5697_v20 = vpop.permute.xlu0 %5696 }
 0xa61   : > { %v5318_v7 = vpop.xlane.xlu1 %5317 }
 0xa62   : > { %v5332_v8 = vsub.f32 %v5066_v28, %v5318_v7 }
 0xa64   : > { %v5344_v9 = vmul.f32 1.442695, %v5332_v8 }
 0xa65   : > { %v5324_v14 = vpop.xlane.xlu1 %5323 }
 0xa66   : > { %7091 = vpow2.f32 %v5344_v9  ;;  %v5334_v61 = vsub.f32 %v5222_v36, %v5324_v14 }
 0xa68   : > { %v5348_v62 = vmul.f32 1.442695, %v5334_v61 }
 0xa69   : > { %v5354_v63 = vpop.xlane.xlu1 %5353 }
 0xa6a   : > { %7093 = vpow2.f32 %v5348_v62 }
 0xa6b   : > { %7095 = vrcp.f32 %v5354_v63 }
 0xa6c   : > { %7097 = vrcp.f32 %v5363_v49 }
 0xa6d   : > { %v5360_v2 = vpop.xlane.xlu1 %5359 }
 0xa6e   : > { %7099 = vrcp.f32 %v5360_v2 }
 0xa6f   : > { %7101 = vrcp.f32 %v5369_v19 }
 0xa70   : > { %v7092_v3 = vpop.eup %7091  ;;  %7103 = vrcp.f32 %v5375_v60 }
 0xa71   : > { %v5393_v4 = vpop.permute.xlu1 %5392  ;;  %v5364_v15 = vsel %vm327_vm2, %v7092_v3, 0.0 }
 0xa72   : > { %5365 = vadd.xlane.f32.xlu1 %v5364_v15  ;;  %6877 = vmatpush3.msra.mxu1 %v5393_v4 }
 0xa73   : > { %6886 = vmatprep.subr.mxu1 %v7117_v6 }
 0xa74   : > { %v7094_v23 = vpop.eup %7093 }
 0xa75   : > { %v7096_v54 = vpop.eup %7095  ;;  %v5545_v16 = vpop.permute.xlu1 %5544  ;;  %v5370_v18 = vsel %vm327_vm2, %v7094_v23, 0.0 }
 0xa76   : > { %v7098_v41 = vpop.eup %7097  ;;  %v5384_v22 = vmul.f32 %v7096_v54, %v7086_v17  ;;  %5371 = vadd.xlane.f32.xlu1 %v5370_v18  ;;  %v6369_v17 = vld [vmem:[%s7964_s3] ss:$0 sm:$0xff] }
 0xa77   : > { %v5387_v25 = vmul.f32 %v7098_v41, %v7868_v40 }
 0xa78   : > { %v7100_v1 = vpop.eup %7099  ;;  %6879 = vmatmul.mubr.msk.f32.vlgmr.msra.gmra.mrb[54].mxu1 %vm327_vm2, %v5384_v22 }
 0xa79   : > { %v5386_v27 = vmul.f32 %v7100_v1, %v7088_v12  ;;  %6887 = vmatpush3.msra.mxu1 %v5545_v16  ;;  %v5621_v29 = vpop.permute.xlu1 %5620  ;;  %6888 = vmatprep.mubr.msk.f32.mxu1 %vm7118_vm1, %v7117_v6  ;;  %v7102_v30 = vpop.eup %7101 }
 0xa7a   : > { %6892 = vmatpush3.msra.mxu0 %v5621_v29  ;;  %6896 = vmatprep.subr.mxu1 %v7117_v6  ;;  %v5389_v42 = vmul.f32 %v7102_v30, %v7872_v48  ;;  %v7104_v38 = vpop.eup %7103 }
 0xa7b   : > { %6894 = vmatmul.mubr.msk.f32.vlgmr.msra.gmra.mrb[76].mxu0 %vm327_vm2, %v5387_v25  ;;  %6901 = vmatprep.subr.mxu0 %v7117_v6  ;;  %v5391_v32 = vmul.f32 %v7104_v38, %v7876_v52 }
 0xa7c   : > { %6889 = vmatmul.mubr.msk.f32.vlgmr.msra.gmra.mrb[56].mxu1 %vm327_vm2, %v5386_v27  ;;  %6903 = vmatprep.mubr.msk.f32.mxu0 %vm7118_vm1, %v7117_v6 }
 0xa7d   : > { %6897 = vmatpush3.msra.mxu1 %v5697_v20  ;;  %v5773_v33 = vpop.permute.xlu1 %5772  ;;  %6898 = vmatprep.mubr.msk.f32.mxu1 %vm7118_vm1, %v7117_v6 }
 0xa7e   : > { %6902 = vmatpush3.msra.mxu0 %v5773_v33  ;;  %6906 = vmatprep.subr.mxu1 %v7117_v6 }
 0xa7f   : > { %6904 = vmatmul.mubr.msk.f32.vlgmr.msra.gmra.mrb[78].mxu0 %vm327_vm2, %v5389_v42  ;;  %6911 = vmatprep.subr.mxu0 %v7117_v6 }
 0xa80   : > { %6913 = vmatprep.mubr.msk.f32.mxu0 %vm7118_vm1, %v7117_v6 }
 0xa87   : > { %5924 = vrot.lane.b32.xlu1 %v7201_v13, %s7129_s14  ;;  %v5849_v13 = vpop.permute.xlu0 %5848 }
 0xaff   : > { %v5366_v34 = vpop.xlane.xlu1 %5365 }
 0xb00   : > { %7105 = vrcp.f32 %v5366_v34 }
 0xb03   : > { %v5372_v37 = vpop.xlane.xlu1 %5371 }
 0xb04   : > { %7107 = vrcp.f32 %v5372_v37 }
 0xb07   : > { %v5925_v39 = vpop.permute.xlu1 %5924 }
 0xb08   : > { %6912 = vmatpush3.msra.mxu0 %v5925_v39 }
 0xb09   : > { %6914 = vmatmul.mubr.msk.f32.vlgmr.msra.gmra.mrb[80].mxu0 %vm327_vm2, %v5391_v32 }
 0xb0a   : > { %v7106_v31 = vpop.eup %7105 }
 0xb0b   : > { %v5388_v35 = vmul.f32 %v7106_v31, %v7092_v3 }
 0xb0d   : > { %6899 = vmatmul.mubr.msk.f32.vlgmr.msra.gmra.mrb[58].mxu1 %vm327_vm2, %v5388_v35 }
 0xb0e   : > { %v7108_v44 = vpop.eup %7107  ;;  %6907 = vmatpush3.msra.mxu1 %v5849_v13  ;;  %6908 = vmatprep.mubr.msk.f32.mxu1 %vm7118_vm1, %v7117_v6 }
 0xb0f   : > { %v5390_v40 = vmul.f32 %v7108_v44, %v7094_v23  ;;  %6916 = vmatprep.subr.mxu1 %v6002_v26 }
 0xb11   : > { %6909 = vmatmul.mubr.msk.f32.vlgmr.msra.gmra.mrb[60].mxu1 %vm327_vm2, %v5390_v40 }
 0xb12   : > { %6917 = vmatpush3.msra.mxu1 %v6002_v26 }
 0xb18   : > { %v5540_v46 = vpop.f32.mrb[74].mxu0 }
 0xb19   : > { %v6885_v48 = vpop.f32.mrb[75].mxu0 }
 0xb4b   : > { %v5464_v51 = vpop.f32.mrb[54].mxu1 }
 0xb4c   : > { %v6880_v52 = vpop.f32.mrb[55].mxu1  ;;  %6918 = vmatprep.mubr.msk.f32.mxu1 %vm327_vm2, %v5464_v51 }
 0xb4d   : > { %6919 = vmatmul.mubr.msk.f32.vlgmr.msra.gmra.mrb[34].mxu1 %vm327_vm2, %v5540_v46 }
 0xb4e   : > { %v5692_v53 = vpop.f32.mrb[76].mxu0 }
 0xb4f   : > { %v5616_v55 = vpop.f32.mrb[56].mxu1  ;;  %v6895_v56 = vpop.f32.mrb[77].mxu0 }
 0xb50   : > { %v6890_v43 = vpop.f32.mrb[57].mxu1  ;;  %6921 = vmatprep.mubr.msk.f32.mxu1 %vm327_vm2, %v5616_v55 }
 0xb51   : > { %6922 = vmatmul.mubr.msk.f32.gmra.mrb[36].mxu1 %vm327_vm2, %v5692_v53 }
 0xb52   : > { %v5844_v6 = vpop.f32.mrb[78].mxu0 }
 0xb53   : > { %v6905_v57 = vpop.f32.mrb[79].mxu0 }
 0xbdc   : > { %v5996_v28 = vpop.f32.mrb[80].mxu0 }
 0xbdd   : > { %v6915_v50 = vpop.f32.mrb[81].mxu0 }
 0xbe0   : > { %v5768_v45 = vpop.f32.mrb[58].mxu1 }
 0xbe1   : > { %v6900_v36 = vpop.f32.mrb[59].mxu1  ;;  %6924 = vmatprep.mubr.msk.f32.mxu1 %vm327_vm2, %v5768_v45 }
 0xbe2   : > { %6925 = vmatmul.mubr.msk.f32.gmra.mrb[38].mxu1 %vm327_vm2, %v5844_v6 }
 0xbe4   : > { %v5920_v5 = vpop.f32.mrb[60].mxu1 }
 0xbe5   : > { %v6910_v10 = vpop.f32.mrb[61].mxu1  ;;  %6927 = vmatprep.mubr.msk.f32.mxu1 %vm327_vm2, %v5920_v5 }
 0xbe6   : > { %6928 = vmatmul.mubr.msk.f32.gmra.mrb[40].mxu1 %vm327_vm2, %v5996_v28 }
 0xc20   : > { %v6920_v47 = vpop.f32.mrb[34].mxu1 }
 0xc21   : > { %v6148_v12 = vadd.f32 %v6920_v47, %v6369_v17  ;;  %v6093_v58 = vpop.f32.mrb[35].mxu1 }
 0xc22   : > { %v6147_v11 = vadd.f32 %v6369_v17, %v6093_v58 }
 0xc23   : > { %6156 = vst.msk [vmem:[%s199_s24 + $0x8] sm:$0xff] %vm246_vm0, %v6148_v12 }
 0xc24   : > { %6155 = vst.msk [vmem:[%s199_s24] sm:$0xff] %vm246_vm0, %v6147_v11  ;;  %v6923_v49 = vpop.f32.mrb[36].mxu1 }
 0xc25   : > { %v6150_v19 = vadd.f32 %v6923_v49, %v6369_v17  ;;  %v6103_v60 = vpop.f32.mrb[37].mxu1 }
 0xc26   : > { %v6149_v59 = vadd.f32 %v6369_v17, %v6103_v60 }
 0xc27   : > { %6158 = vst.msk [vmem:[%s199_s24 + $0x18] sm:$0xff] %vm246_vm0, %v6150_v19 }
 0xc28   : > { %6157 = vst.msk [vmem:[%s199_s24 + $0x10] sm:$0xff] %vm246_vm0, %v6149_v59 }
 0xcb5   : > { %v6926_v21 = vpop.f32.mrb[38].mxu1 }
 0xcb6   : > { %v6152_v0 = vadd.f32 %v6926_v21, %v6369_v17  ;;  %v6113_v7 = vpop.f32.mrb[39].mxu1 }
 0xcb7   : > { %v6151_v8 = vadd.f32 %v6369_v17, %v6113_v7 }
 0xcb8   : > { %6160 = vst.msk [vmem:[%s199_s24 + $0x28] sm:$0xff] %vm246_vm0, %v6152_v0 }
 0xcb9   : > { %6159 = vst.msk [vmem:[%s199_s24 + $0x20] sm:$0xff] %vm246_vm0, %v6151_v8  ;;  %v6929_v9 = vpop.f32.mrb[40].mxu1 }
 0xcba   : > { %v6154_v14 = vadd.f32 %v6929_v9, %v6369_v17  ;;  %v6123_v61 = vpop.f32.mrb[41].mxu1 }
 0xcbb   : > { %v6153_v62 = vadd.f32 %v6369_v17, %v6123_v61 }
 0xcbc   : > { %6162 = vst.msk [vmem:[%s199_s24 + $0x38] sm:$0xff] %vm246_vm0, %v6154_v14 }
 0xcbd   : > { %6161 = vst.msk [vmem:[%s199_s24 + $0x30] sm:$0xff] %vm246_vm0, %v6153_v62 }
 0xcbe PF: > { %s14_s15 = sadd.s32 1, %s7115_s15  }
 0xcbf   : > { %p11_p4 = scmp.ge.s32.totalorder %s14_s15, 4  }
 0xcc1   :  { %13 = sbr.rel (!%p11_p4) target bundleno = 1 (0x1), region = 69 }

</bundles_post_ra>
